<compile_context>
chip_gen: v5e
topology: v5e:2x2
jax: 0.10.0
libtpu: 0.0.40
codegen_flags: <defaults>
</compile_context>

<pallas_src>
import functools

import jax
import jax.numpy as jnp
from jax.experimental import pallas as pl
from jax.experimental.pallas import tpu as pltpu


def _round_up(x, m):
    return (x + m - 1) // m * m


def disc_kernel(x_ref, w1_ref, b1_ref, w2_ref, b2_ref, o_ref):
    """One batch tile of the fused discriminator forward.

    x_ref : (TB, D)  f32 (native layout, cast to bf16 in-kernel)
    w1_ref: (D, H)   bf16  -- layer-1 weight pre-transposed, VMEM-resident
    b1_ref: (1, H)   f32
    w2_ref: (1, H)   f32
    b2_ref: (1,)     f32   -- scalar bias in SMEM
    o_ref : (TB, 1)  f32
    """
    # Free VPU cast right before the MXU (memory-bound kernel: VALU has slack).
    x = x_ref[...].astype(jnp.bfloat16)
    # Linear 1 on the MXU: (TB, D) @ (D, H) -> (TB, H), bf16 in, f32 accumulate.
    h = jnp.dot(x, w1_ref[...], preferred_element_type=jnp.float32)
    h = h + b1_ref[...]                          # row-broadcast bias
    # LeakyReLU(0.1): single VPU max.
    h = jnp.maximum(h, 0.1 * h)
    # Linear 2 (out_features == 1): VPU multiply + lane reduction (no 1-col MXU op).
    y = jnp.sum(h * w2_ref[...], axis=1, keepdims=True) + b2_ref[0]   # (TB, 1)
    # Sigmoid: exp and approximate reciprocal both live on the EUP slot.
    o_ref[...] = pl.reciprocal(1.0 + jnp.exp(-y), approx=True).astype(o_ref.dtype)


def discriminator_forward(x, w1, b1, w2, b2, *, tile_b=2048):
    """Fused forward pass.

    x : (B, D) float32 (or bf16); params in PyTorch layout:
        w1 (H, D), b1 (H,), w2 (1, H), b2 (1,)
    Returns (B, 1) float32 == sigmoid(leaky_relu(x @ w1.T + b1, 0.1) @ w2.T + b2)
    """
    B, D = x.shape
    H = w1.shape[0]

    # Batch tile: multiple of 8 (sublane rule), clamped to the (rounded) batch.
    tb = _round_up(min(tile_b, _round_up(B, 8)), 8)
    n_tiles = pl.cdiv(B, tb)   # ragged final tile allowed; OOB stores are masked
    # NOTE(v7x): for large B, pick tile_b so n_tiles is even >= 2 to balance the
    # two TensorCores on the "parallel" batch axis.

    # Only the tiny W1 (H*D elements) gets wrapper-side layout work.
    w1_t = w1.T.astype(jnp.bfloat16)                 # (D, H)
    b1_r = b1.reshape(1, H).astype(jnp.float32)      # (1, H)
    w2_r = w2.reshape(1, H).astype(jnp.float32)      # (1, H)
    b2_s = b2.reshape(1).astype(jnp.float32)         # (1,) scalar in SMEM

    # VMEM budget sized to actual usage (double-buffered x tile dominates).
    x_item = jnp.dtype(x.dtype).itemsize
    vmem_needed = (2 * tb * D * x_item       # x tile, double-buffered
                   + 2 * D * H * 2           # W1 bf16 (buffered, DMA'd once)
                   + 2 * tb * 4              # output tile
                   + 2 * tb * H * 4)         # h + temporaries
    vmem_limit = int(min(64 << 20, max(16 << 20, vmem_needed + (4 << 20))))

    out = pl.pallas_call(
        disc_kernel,
        out_shape=jax.ShapeDtypeStruct((B, 1), jnp.float32),
        grid_spec=pltpu.PrefetchScalarGridSpec(
            num_scalar_prefetch=0,
            grid=(n_tiles,),
            in_specs=[
                pl.BlockSpec((tb, D), lambda i: (i, 0)),            # x tile, native layout
                pl.BlockSpec((D, H), lambda i: (0, 0)),             # W1^T: full, VMEM-resident
                pl.BlockSpec((1, H), lambda i: (0, 0)),             # b1 row
                pl.BlockSpec((1, H), lambda i: (0, 0)),             # w2 row
                pl.BlockSpec(memory_space=pltpu.MemorySpace.SMEM),  # b2 scalar in SMEM
            ],
            out_specs=pl.BlockSpec((tb, 1), lambda i: (i, 0)),
        ),
        compiler_params=pltpu.CompilerParams(
            dimension_semantics=("parallel",),   # batch tiles are independent
            vmem_limit_bytes=vmem_limit,
        ),
    )(x, w1_t, b1_r, w2_r, b2_s)

    return out


def init_params(key, image_dim, hidden=128):
    """Deterministic init mimicking nn.Linear defaults (uniform +-1/sqrt(fan_in))."""
    k1, k2, k3, k4 = jax.random.split(key, 4)
    bound1 = 1.0 / jnp.sqrt(image_dim)
    w1 = jax.random.uniform(k1, (hidden, image_dim), jnp.float32, -bound1, bound1)
    b1 = jax.random.uniform(k2, (hidden,), jnp.float32, -bound1, bound1)
    bound2 = 1.0 / jnp.sqrt(hidden)
    w2 = jax.random.uniform(k3, (1, hidden), jnp.float32, -bound2, bound2)
    b2 = jax.random.uniform(k4, (1,), jnp.float32, -bound2, bound2)
    return w1, b1, w2, b2


def reference_forward(x, w1, b1, w2, b2):
    h = x @ w1.T + b1
    h = jnp.where(h > 0, h, 0.1 * h)
    y = h @ w2.T + b2
    return 1.0 / (1.0 + jnp.exp(-y))


if __name__ == "__main__":
    key = jax.random.PRNGKey(0)
    kx, kp = jax.random.split(key)

    # MNIST-style discriminator; B deliberately not tile-aligned so the demo
    # exercises the ragged final tile (200 = 128 + 72).
    B, image_dim = 200, 784
    x = jax.random.normal(kx, (B, image_dim), jnp.float32)
    w1, b1, w2, b2 = init_params(kp, image_dim)

    # tile_b=128 here so the demo grid has 2 steps; production default is 2048.
    fwd = jax.jit(functools.partial(discriminator_forward, tile_b=128))
    out = jax.block_until_ready(fwd(x, w1, b1, w2, b2))

    ref = reference_forward(x, w1, b1, w2, b2)
    assert out.shape == (B, 1)
    # bf16 MXU inputs (f32 accumulation) + approximate EUP reciprocal in sigmoid.
    assert jnp.allclose(out, ref, atol=1e-2, rtol=1e-2), float(jnp.max(jnp.abs(out - ref)))

    print("KERNEL_OK")
</pallas_src>

<mosaic_0001>
module attributes {stable_mosaic.version = 11 : i64} {
  func.func @disc_kernel(%arg0: i32, %arg1: memref<128x784xf32, #tpu.memory_space<vmem>>, %arg2: memref<784x128xbf16, #tpu.memory_space<vmem>>, %arg3: memref<1x128xf32, #tpu.memory_space<vmem>>, %arg4: memref<1x128xf32, #tpu.memory_space<vmem>>, %arg5: memref<1xf32, #tpu.memory_space<smem>>, %arg6: memref<128x1xf32, #tpu.memory_space<vmem>>) attributes {dimension_semantics = [#tpu.dimension_semantics<parallel>], iteration_bounds = array<i64: 2>, scalar_prefetch = 0 : i64, scratch_operands = 0 : i64, tpu.core_type = #tpu.core_type<tc>, window_params = [{transform_indices = @transform_0, window_bounds = array<i64: 128, 784>}, {pipeline_mode = #tpu.pipeline_mode<synchronous>, transform_indices = @transform_1, window_bounds = array<i64: 784, 128>}, {pipeline_mode = #tpu.pipeline_mode<synchronous>, transform_indices = @transform_2, window_bounds = array<i64: 1, 128>}, {pipeline_mode = #tpu.pipeline_mode<synchronous>, transform_indices = @transform_3, window_bounds = array<i64: 1, 128>}, {transform_indices = @transform_4, window_bounds = array<i64: 1>}, {transform_indices = @transform_5, window_bounds = array<i64: 128, 1>}]} {
    %c0 = arith.constant 0 : index
    %c0_0 = arith.constant 0 : index
    %0 = vector.load %arg1[%c0, %c0_0] : memref<128x784xf32, #tpu.memory_space<vmem>>, vector<128x784xf32>
    %1 = arith.truncf %0 : vector<128x784xf32> to vector<128x784xbf16>
    %c0_1 = arith.constant 0 : index
    %c0_2 = arith.constant 0 : index
    %2 = vector.load %arg2[%c0_1, %c0_2] : memref<784x128xbf16, #tpu.memory_space<vmem>>, vector<784x128xbf16>
    %cst = arith.constant dense<0.000000e+00> : vector<128x128xf32>
    %3 = tpu.matmul %1, %2, %cst {dimension_numbers = #tpu.dot_dimension_numbers<[1], [0], [0], [1], [0, 0, 1, 1], [], []>} : vector<128x784xbf16>, vector<784x128xbf16>, vector<128x128xf32> -> vector<128x128xf32>
    %c0_3 = arith.constant 0 : index
    %c0_4 = arith.constant 0 : index
    %4 = vector.load %arg3[%c0_3, %c0_4] : memref<1x128xf32, #tpu.memory_space<vmem>>, vector<1x128xf32>
    %5 = vector.broadcast %4 : vector<1x128xf32> to vector<128x128xf32>
    %6 = arith.addf %3, %5 : vector<128x128xf32>
    %cst_5 = arith.constant 1.000000e-01 : f32
    %7 = vector.broadcast %cst_5 : f32 to vector<128x128xf32>
    %8 = arith.mulf %7, %6 : vector<128x128xf32>
    %9 = arith.maximumf %6, %8 : vector<128x128xf32>
    %c0_6 = arith.constant 0 : index
    %c0_7 = arith.constant 0 : index
    %10 = vector.load %arg4[%c0_6, %c0_7] : memref<1x128xf32, #tpu.memory_space<vmem>>, vector<1x128xf32>
    %11 = vector.broadcast %10 : vector<1x128xf32> to vector<128x128xf32>
    %12 = arith.mulf %9, %11 : vector<128x128xf32>
    %cst_8 = arith.constant dense<0.000000e+00> : vector<128xf32>
    %13 = vector.multi_reduction <add>, %12, %cst_8 [1] : vector<128x128xf32> to vector<128xf32>
    %14 = vector.shape_cast %13 : vector<128xf32> to vector<128x1xf32>
    %c0_9 = arith.constant 0 : index
    %15 = memref.load %arg5[%c0_9] : memref<1xf32, #tpu.memory_space<smem>>
    %16 = vector.broadcast %15 : f32 to vector<128x1xf32>
    %17 = arith.addf %14, %16 : vector<128x1xf32>
    %cst_10 = arith.constant 0.000000e+00 : f32
    %18 = vector.broadcast %cst_10 : f32 to vector<128x1xf32>
    %19 = arith.subf %18, %17 : vector<128x1xf32>
    %20 = math.exp %19 : vector<128x1xf32>
    %cst_11 = arith.constant 1.000000e+00 : f32
    %21 = vector.broadcast %cst_11 : f32 to vector<128x1xf32>
    %22 = arith.addf %21, %20 : vector<128x1xf32>
    %23 = tpu.reciprocal %22 {approx = true} : vector<128x1xf32> -> vector<128x1xf32>
    %c0_12 = arith.constant 0 : index
    %c0_13 = arith.constant 0 : index
    %24 = vector.load %arg6[%c0_12, %c0_13] : memref<128x1xf32, #tpu.memory_space<vmem>>, vector<128x1xf32>
    tpu.vector_store %arg6[%c0_12, %c0_13], %23 {strides = array<i32>} : memref<128x1xf32, #tpu.memory_space<vmem>>, vector<128x1xf32>,
    return
  }
  func.func @transform_0(%arg0: i32) -> (i32, i32) {
    %c0_i32 = arith.constant 0 : i32
    %c0_i32_0 = arith.constant 0 : i32
    return %arg0, %c0_i32 : i32, i32
  }
  func.func @transform_1(%arg0: i32) -> (i32, i32) {
    %c0_i32 = arith.constant 0 : i32
    %c0_i32_0 = arith.constant 0 : i32
    %c0_i32_1 = arith.constant 0 : i32
    return %c0_i32, %c0_i32_0 : i32, i32
  }
  func.func @transform_2(%arg0: i32) -> (i32, i32) {
    %c0_i32 = arith.constant 0 : i32
    %c0_i32_0 = arith.constant 0 : i32
    %c0_i32_1 = arith.constant 0 : i32
    return %c0_i32, %c0_i32_0 : i32, i32
  }
  func.func @transform_3(%arg0: i32) -> (i32, i32) {
    %c0_i32 = arith.constant 0 : i32
    %c0_i32_0 = arith.constant 0 : i32
    %c0_i32_1 = arith.constant 0 : i32
    return %c0_i32, %c0_i32_0 : i32, i32
  }
  func.func @transform_4(%arg0: i32) -> i32 {
    %c0_i32 = arith.constant 0 : i32
    %c0_i32_0 = arith.constant 0 : i32
    return %c0_i32 : i32
  }
  func.func @transform_5(%arg0: i32) -> (i32, i32) {
    %c0_i32 = arith.constant 0 : i32
    %c0_i32_0 = arith.constant 0 : i32
    return %arg0, %c0_i32 : i32, i32
  }
}

</mosaic_0001>

<bundles_post_ra>
// kernel: discriminator_forward.1
= control target key start
LH: loop header
LB: loop body
LE: loop exit
PB: predicated region body
PF: predicated region fallthrough
CT: control target
= control target key end

     0   :  { %s3026_s0 = inlined_call_operand.hbm [shape: f32[200,784], index: 0, kind: input, shape index: {}]   ;;  %s3027_s1 = inlined_call_operand.vmem [shape: bf16[784,128], index: 1, kind: input, shape index: {}]   ;;  %s3028_s2 = inlined_call_operand.vmem [shape: f32[1,128], index: 2, kind: input, shape index: {}]   ;;  %s3029_s3 = inlined_call_operand.vmem [shape: f32[1,128], index: 3, kind: input, shape index: {}]   ;;  %s3030_s4 = inlined_call_operand.<no memory space> [shape: f32[1], index: 4, kind: input, shape index: {}]   ;;  %s3031_s5 = inlined_call_operand.vmem [shape: f32[200,1], index: 5, kind: output, shape index: {}]  }
   0x1   :  { %10 = sst [smem:[#allocation2]] %s3030_s4 }
   0x2   :  { %11 = vsyncpa [#allocation4], 0 }
   0x3   :  { %13 = vsyncpa [#allocation4 + $0x1], 0  ;;  %s2333_s20 = smov 0   ;;  %s2335_s21 = smov 0  }
   0x4   :  { %s2337_s22 = smov 0   ;;  %s2339_s23 = smov 0  }
   0x5 LB: > { %s2352_s4 = sadd.s32 4294967295, %s2263_s23   ;;  %s2355_s24 = sadd.s32 1, %s2263_s23   ;;  %s2263_s23 = sphi %s2339_s23, %s3043_s23   ;;  %s2259_s22 = sphi %s2337_s22, %s3042_s22   ;;  %s2255_s21 = sphi %s2335_s21, %s3041_s21   ;;  %s2251_s20 = sphi %s2333_s20, %s3040_s20  }
   0x6   : > { %s23_s25 = ssub.s32 %s2263_s23, %s2355_s24  ;;  %s26_s26 = sadd.s32 1, %s2259_s22 }
   0x7   : > { %p24_p0 = scmp.eq.s32.totalorder %s23_s25, 0  ;;  %p33_p1 = scmp.ne.s32.totalorder %s2259_s22, %s2255_s21 }
   0x8   : > { %p34_p2 = scmp.eq.s32.totalorder %s2263_s23, 0  ;;  %p39_p3 = scmp.ne.s32.totalorder %s2255_s21, %s2251_s20 }
   0x9   : > { %s2365_s27 = scalar_select %p24_p0, %s2259_s22, %s26_s26  }
   0xa   : > { %p35_p4 = por %p34_p2, %p33_p1  ;;  %p40_p5 = scmp.eq.s32.totalorder %s2352_s4, 0 }
   0xb   : > { %p147_p6 = scmp.eq.s32.totalorder %s2352_s4, 1  ;;  %p1683_p9 = scmp.ge.s32.totalorder %s2263_s23, 2 }
   0xc   : > { %p2369_p7 = por %p40_p5, %p39_p3 }
   0xd   : > { %p2373_p8 = por %p147_p6, %p33_p1  ;;  %181 = sbr.rel (%p1683_p9) target bundleno = 59 (0x3b), region = 32 }
  0x12   : > { %184 = sbr.rel (!%p35_p4) target bundleno = 59 (0x3b), region = 36  ;;  %s185_s30 = sand.u32 (%p35_p4), 1, %s2259_s22  }
  0x13   : > { %s1684_s6 = sshll.u32 (%p35_p4), %s2263_s23, 4  ;;  %s1990_s7 = smul.u32 (%p35_p4), 896, %s185_s30 }
  0x14   : > { %s191_s8 = ssub.s32 (%p35_p4), 25, %s1684_s6  ;;  %s2380_s12 = scalar_lea.sflag (%p35_p4), [#allocation4], %s185_s30 }
  0x15   : > { %p192_p10 = scmp.lt.s32.totalorder (%p35_p4), %s191_s8, 16  ;;  %s189_s13 = scalar_lea.vmem (%p35_p4), [#allocation3], %s1990_s7 }
  0x17   : > { %s3045_s8 = smov (!%p192_p10, %s191_s8), 16 }
  0x18   : > { %s1686_s9 = smul.u32 56, %s3045_s8 }
  0x1a   : > { %s196_s10 = ssub.s32 896, %s1686_s9 }
  0x1b   : > { %s197_s11 = sshll.u32 %s196_s10, 4 }
  0x1c   : > { %198 = vsyncadd %s2380_s12, %s197_s11  ;;  %p2383_p11 = scmp.ne.s32.totalorder %s1686_s9, 0  ;;  %s1991_s15 = smul.u32 896, %s2263_s23 }
  0x1d   : > { %s2388_s16 = sshll.u32 %s189_s13, 4  ;;  %s2390_s17 = smul.u32 896, %s3045_s8  ;;  %s207_s16 = int_to_ptr.vmem [resolvable:$true] %s2388_s16 }
  0x1e   : > { %s202_s20 = scalar_lea.hbm %s3026_s0, %s1991_s15  ;;  %s2169_s11 = scalar_lea.hbm %s3026_s0, 1400 }
  0x1f   : > { %s204_s25 = sshll.u32 %s202_s20, 4  ;;  %s2160_s30 = sshrl.u32 %s2390_s17, 4  ;;  %s2396_s25 = int_to_ptr.hbm [resolvable:$true] %s204_s25 }
  0x20   : > { %s2158_s26 = sshra.s32 %s2396_s25, 4  ;;  %s2196_s6 = sshll.u32 %s2160_s30, 4  ;;  %s2159_s26 = int_to_ptr.hbm [resolvable:$true] %s2158_s26 }
  0x21   : > { %p2162_p12 = scmp.ne.s32.totalorder %s2196_s6, %s2390_s17  ;;  %s2163_s7 = sadd.s32 1, %s2160_s30 }
  0x22   : > { %p2170_p2 = scmp.lt.s32.totalorder %s2159_s26, %s3026_s0 }
  0x23   : > { %s3047_s7 = smov (!%p2162_p12, %s2163_s7), %s2160_s30 }
  0x24   : > { %s2165_s8 = scalar_lea.hbm %s2159_s26, %s3047_s7 }
  0x25   : > { %p2166_p13 = scmp.ne.s32.totalorder %s2159_s26, %s2165_s8  ;;  %p2171_p3 = scmp.lt.s32.totalorder %s2169_s11, %s2165_s8 }
  0x27   : > { %p2167_p0 = pnand %p2166_p13, %p2383_p11  ;;  %p2172_p4 = por %p2171_p3, %p2170_p2 }
  0x29   : > { %p2168_p1 = pneg %p2167_p0 }
  0x2b   : > { %p2173_p5 = pnand %p2172_p4, %p2168_p1 }
  0x2d   : > { %2176 = shalt.err (!%p2173_p5)
}
  0x2e   : > { %s2177_s18 = sshra.s32 %s207_s16, 4  ;;  %s2297_s20 = smov [#allocation3]   ;;  %s2178_s18 = int_to_ptr.vmem [resolvable:$true] %s2177_s18 }
  0x2f   : > { %s2184_s19 = scalar_lea.vmem %s2178_s18, %s3047_s7  ;;  %s2188_s30 = scalar_lea.vmem %s2297_s20, 1792 }
  0x30   : > { %p2185_p6 = scmp.ne.s32.totalorder %s2178_s18, %s2184_s19  ;;  %p2190_p12 = scmp.lt.s32.totalorder %s2188_s30, %s2184_s19 }
  0x32   : > { %p2186_p9 = pnand %p2185_p6, %p2383_p11 }
  0x34   : > { %p2187_p10 = pneg %p2186_p9 }
  0x36   : > { %p2192_p13 = pnand %p2190_p12, %p2187_p10 }
  0x38   : > { %2195 = shalt.err (!%p2192_p13)
}
  0x39   : > { %s2298_s26 = smov 896   ;;  %s2299_s6 = smov 56  }
  0x3a   : > { %212 = dma.hbm_to_vmem [thread:$0]  (%p2383_p11), %s2396_s25, %s2390_s17, %s207_s16, %s2380_s12, %s2298_s26, %s2298_s26, %s2299_s6  }
  0x3b PF: > { %p1691_p0 = scmp.ge.s32.totalorder %s2263_s23, 1  ;;  %p214_p1 = scmp.lt.s32.totalorder %s2263_s23, 3 }
  0x3d   : > { %p215_p2 = pnand %p1691_p0, %p214_p1 }
  0x3e   : > { %s2423_s7 = sand.u32 (!%p215_p2), 1, %s2255_s21  }
  0x3f   : > { %218 = sbr.rel (%p215_p2) target bundleno = 650 (0x28a), region = 40  ;;  %s221_s9 = scalar_lea.sflag (!%p215_p2), [#allocation4], %s2423_s7 }
  0x40   : > { %s1992_s8 = smul.u32 (!%p215_p2), 896, %s2423_s7 }
  0x42   : > { %s2427_s10 = scalar_lea.vmem (!%p215_p2), [#allocation3], %s1992_s8 }
  0x44   : > { %2246 = dma.done.wait (%p2369_p7), %s221_s9, 14336  }
  0x45   : > { %2248 = vsyncadd (%p2369_p7), %s221_s9, 4294952960  ;;  %v1921_v0 = vld [vmem:[%s3027_s1 + $0x38] sm:$0xff]  ;;  %v1920_v3 = vld [vmem:[%s3027_s1 + $0x30] sm:$0xff]  ;;  %vm827_vm0 = vcmask 130048   ;;  %s1279_s19 = sld [smem:[#allocation2]]  ;;  %s1692_s20 = sshll.u32 %s2423_s7, 7 }
  0x46   : > { %v2439_v1 = vld [vmem:[%s3027_s1 + $0xb8] sm:$0xff]  ;;  %852 = vmatpush.bf16.msra.mxu0 %v1921_v0  ;;  %1966 = vmatpush.bf16.msra.mxu3 %v1921_v0  ;;  %v2454_v4 = vld [vmem:[%s3027_s1 + $0xb0] sm:$0xff]  ;;  %v1919_v6 = vld [vmem:[%s3027_s1 + $0x28] sm:$0xff]  ;;  %vm1377_vm1 = vcmask 7168   ;;  %s2872_s30 = scalar_lea.vmem [#allocation5], %s1692_s20   ;;  %s1898_s7 = sshll.u32 (%p2373_p8), %s2352_s4, 4 }
  0x47   : > { %v2444_v2 = vld [vmem:[%s3027_s1 + $0x78] sm:$0xff]  ;;  %1982 = vmatpush.bf16.msra.mxu2 %v2439_v1  ;;  %v2459_v5 = vld [vmem:[%s3027_s1 + $0x70] sm:$0xff]  ;;  %v2469_v7 = vld [vmem:[%s3027_s1 + $0xa8] sm:$0xff]  ;;  %s1963_s26 = sshll.u32 (%p2373_p8), %s2352_s4, 7  ;;  %s1402_s6 = ssub.s32 (%p2373_p8), 25, %s1898_s7 }
  0x48   : > { %1974 = vmatpush.bf16.msra.mxu1 %v2444_v2  ;;  %v2474_v8 = vld [vmem:[%s3027_s1 + $0x68] sm:$0xff]  ;;  %v1918_v9 = vld [vmem:[%s3027_s1 + $0x20] sm:$0xff]  ;;  %v1917_v12 = vld [vmem:[%s3027_s1 + $0x18] sm:$0xff]  ;;  %s2926_s12 = scalar_lea.vmem (%p2373_p8), %s3031_s5, %s1963_s26   ;;  %p1403_p7 = scmp.lt.s32.totalorder (%p2373_p8), %s1402_s6, 16 }
  0x49   : > { %v2484_v10 = vld [vmem:[%s3027_s1 + $0xa0] sm:$0xff]  ;;  %v2499_v13 = vld [vmem:[%s3027_s1 + $0x98] sm:$0xff]  ;;  %v1916_v15 = vld [vmem:[%s3027_s1 + $0x10] sm:$0xff] }
  0x4a   : > { %853 = vmatpush.bf16.msra.mxu0 %v1920_v3  ;;  %1967 = vmatpush.bf16.msra.mxu3 %v1920_v3  ;;  %v2489_v11 = vld [vmem:[%s3027_s1 + $0x60] sm:$0xff]  ;;  %v2504_v14 = vld [vmem:[%s3027_s1 + $0x58] sm:$0xff]  ;;  %v2514_v16 = vld [vmem:[%s3027_s1 + $0x90] sm:$0xff] }
  0x4b   : > { %1983 = vmatpush.bf16.msra.mxu2 %v2454_v4  ;;  %v2519_v17 = vld [vmem:[%s3027_s1 + $0x50] sm:$0xff]  ;;  %v1915_v18 = vld [vmem:[%s3027_s1 + $0x8] sm:$0xff]  ;;  %v1914_v21 = vld [vmem:[%s3027_s1] sm:$0xff] }
  0x4c   : > { %1975 = vmatpush.bf16.msra.mxu1 %v2459_v5  ;;  %v2529_v19 = vld [vmem:[%s3027_s1 + $0x88] sm:$0xff]  ;;  %v2542_v22 = vld [vmem:[%s3027_s1 + $0x80] sm:$0xff]  ;;  %v270_v25 = vld [vmem:[%s2427_s10 + $0x38] sm:$0xff] }
  0x4d   : > { %v2534_v20 = vld [vmem:[%s3027_s1 + $0x48] sm:$0xff]  ;;  %v2547_v23 = vld [vmem:[%s3027_s1 + $0x40] sm:$0xff]  ;;  %v298_v27 = vld [vmem:[%s2427_s10 + $0x118] sm:$0xff] }
  0x4e   : > { %854 = vmatpush.bf16.msra.mxu0 %v1919_v6  ;;  %1968 = vmatpush.bf16.msra.mxu3 %v1919_v6  ;;  %v263_v24 = vld [vmem:[%s2427_s10] sm:$0xff]  ;;  %v293_v28 = vld [vmem:[%s2427_s10 + $0xf0] sm:$0xff]  ;;  %v300_v29 = vld [vmem:[%s2427_s10 + $0x128] sm:$0xff] }
  0x4f   : > { %1984 = vmatpush.bf16.msra.mxu2 %v2469_v7  ;;  %v291_v26 = vld [vmem:[%s2427_s10 + $0xe0] sm:$0xff]  ;;  %v292_v30 = vld [vmem:[%s2427_s10 + $0xe8] sm:$0xff]  ;;  %v1945_v32 = vld [vmem:[%s3027_s1 + $0xf8] sm:$0xff]  ;;  %v375_v33 = vpack.c.bf16 %v270_v25, %v263_v24  ;;  %v391_v35 = vpack.c.bf16 %v300_v29, %v293_v28 }
  0x50   : > { %1976 = vmatpush.bf16.msra.mxu1 %v2474_v8  ;;  %v299_v31 = vld [vmem:[%s2427_s10 + $0x120] sm:$0xff]  ;;  %v389_v34 = vpack.c.bf16 %v298_v27, %v291_v26  ;;  %v1961_v38 = vld [vmem:[%s3027_s1 + $0x178] sm:$0xff]  ;;  %v1944_v39 = vld [vmem:[%s3027_s1 + $0xf0] sm:$0xff] }
  0x51   : > { %v390_v36 = vpack.c.bf16 %v299_v31, %v292_v30  ;;  %v1962_v37 = vld [vmem:[%s3027_s1 + $0x180] sm:$0xff]  ;;  %v1960_v40 = vld [vmem:[%s3027_s1 + $0x170] sm:$0xff]  ;;  %v1943_v41 = vld [vmem:[%s3027_s1 + $0xe8] sm:$0xff] }
  0x52   : > { %855 = vmatpush.bf16.msra.mxu0 %v1918_v9  ;;  %1969 = vmatpush.bf16.msra.mxu3 %v1918_v9  ;;  %v1959_v42 = vld [vmem:[%s3027_s1 + $0x168] sm:$0xff]  ;;  %v1942_v43 = vld [vmem:[%s3027_s1 + $0xe0] sm:$0xff]  ;;  %v277_v44 = vld [vmem:[%s2427_s10 + $0x70] sm:$0xff] }
  0x53   : > { %1985 = vmatpush.bf16.msra.mxu2 %v2484_v10  ;;  %v284_v45 = vld [vmem:[%s2427_s10 + $0xa8] sm:$0xff]  ;;  %v305_v46 = vld [vmem:[%s2427_s10 + $0x150] sm:$0xff]  ;;  %v307_v48 = vld [vmem:[%s2427_s10 + $0x160] sm:$0xff] }
  0x54   : > { %1977 = vmatpush.bf16.msra.mxu1 %v2489_v11  ;;  %v312_v47 = vld [vmem:[%s2427_s10 + $0x188] sm:$0xff]  ;;  %v314_v49 = vld [vmem:[%s2427_s10 + $0x198] sm:$0xff]  ;;  %v313_v51 = vld [vmem:[%s2427_s10 + $0x190] sm:$0xff]  ;;  %v382_v53 = vpack.c.bf16 %v284_v45, %v277_v44 }
  0x55   : > { %v306_v50 = vld [vmem:[%s2427_s10 + $0x158] sm:$0xff]  ;;  %v1958_v52 = vld [vmem:[%s3027_s1 + $0x160] sm:$0xff]  ;;  %v396_v54 = vpack.c.bf16 %v312_v47, %v305_v46  ;;  %v398_v55 = vpack.c.bf16 %v314_v49, %v307_v48  ;;  %v1940_v59 = vld [vmem:[%s3027_s1 + $0xd0] sm:$0xff] }
  0x56   : > { %856 = vmatpush.bf16.msra.mxu0 %v1917_v12  ;;  %1970 = vmatpush.bf16.msra.mxu3 %v1917_v12  ;;  %v397_v56 = vpack.c.bf16 %v313_v51, %v306_v50  ;;  %v1941_v57 = vld [vmem:[%s3027_s1 + $0xd8] sm:$0xff]  ;;  %v319_v60 = vld [vmem:[%s2427_s10 + $0x1c0] sm:$0xff]  ;;  %v264_v62 = vld [vmem:[%s2427_s10 + $0x8] sm:$0xff] }
  0x57   : > { %1986 = vmatpush.bf16.msra.mxu2 %v2499_v13  ;;  %v1957_v58 = vld [vmem:[%s3027_s1 + $0x158] sm:$0xff]  ;;  %v271_v63 = vld [vmem:[%s2427_s10 + $0x40] sm:$0xff]  ;;  %v321_v0 = vld [vmem:[%s2427_s10 + $0x1d0] sm:$0xff] }
  0x58   : > { %1978 = vmatpush.bf16.msra.mxu1 %v2504_v14  ;;  %v326_v61 = vld [vmem:[%s2427_s10 + $0x1f8] sm:$0xff]  ;;  %v320_v3 = vld [vmem:[%s2427_s10 + $0x1c8] sm:$0xff]  ;;  %v1956_v12 = vld [vmem:[%s3027_s1 + $0x150] sm:$0xff] }
  0x59   : > { %v403_v6 = vpack.c.bf16 %v326_v61, %v319_v60  ;;  %v341_v24 = vld [vmem:[%s2427_s10 + $0x270] sm:$0xff]  ;;  %v1954_v28 = vld [vmem:[%s3027_s1 + $0x140] sm:$0xff]  ;;  %v354_v30 = vld [vmem:[%s2427_s10 + $0x2d8] sm:$0xff] }
  0x5a   : > { %857 = vmatpush.bf16.msra.mxu0 %v1916_v15  ;;  %1971 = vmatpush.bf16.msra.mxu3 %v1916_v15  ;;  %v340_v15 = vld [vmem:[%s2427_s10 + $0x268] sm:$0xff]  ;;  %v347_v29 = vld [vmem:[%s2427_s10 + $0x2a0] sm:$0xff]  ;;  %v265_v31 = vld [vmem:[%s2427_s10 + $0x10] sm:$0xff] }
  0x5b   : > { %1987 = vmatpush.bf16.msra.mxu2 %v2514_v16  ;;  %v279_v44 = vld [vmem:[%s2427_s10 + $0x80] sm:$0xff]  ;;  %v286_v45 = vld [vmem:[%s2427_s10 + $0xb8] sm:$0xff]  ;;  %v369_v49 = vld [vmem:[%s2427_s10 + $0x350] sm:$0xff] }
  0x5c   : > { %1979 = vmatpush.bf16.msra.mxu1 %v2519_v17  ;;  %v363_v46 = vld [vmem:[%s2427_s10 + $0x320] sm:$0xff]  ;;  %v370_v47 = vld [vmem:[%s2427_s10 + $0x358] sm:$0xff]  ;;  %v1948_v50 = vld [vmem:[%s3027_s1 + $0x110] sm:$0xff] }
  0x5d   : > { %v362_v48 = vld [vmem:[%s2427_s10 + $0x318] sm:$0xff]  ;;  %v269_v61 = vld [vmem:[%s2427_s10 + $0x30] sm:$0xff] }
  0x5e   : > { %858 = vmatpush.bf16.msra.mxu0 %v1915_v18  ;;  %1972 = vmatpush.bf16.msra.mxu3 %v1915_v18  ;;  %v285_v18 = vld [vmem:[%s2427_s10 + $0xb0] sm:$0xff]  ;;  %v274_v60 = vld [vmem:[%s2427_s10 + $0x58] sm:$0xff] }
  0x5f   : > { %1988 = vmatpush.bf16.msra.mxu2 %v2529_v19 }
  0x60   : > { %1980 = vmatpush.bf16.msra.mxu1 %v2534_v20 }
  0x62   : > { %859 = vmatpush.bf16.msra.mxu0 %v1914_v21  ;;  %1973 = vmatpush.bf16.msra.mxu3 %v1914_v21  ;;  %v342_v21 = vld [vmem:[%s2427_s10 + $0x278] sm:$0xff] }
  0x63   : > { %1989 = vmatpush.bf16.msra.mxu2 %v2542_v22 }
  0x64   : > { %1981 = vmatpush.bf16.msra.mxu1 %v2547_v23 }
  0x65   : > { %860 = vmatmul.bf16.vlgmr.msra.gmra.mxu0 %v375_v33  ;;  %870 = vmatmul.bf16.vlgmr.msra.gmra.mxu3 %v389_v34  ;;  %v349_v33 = vld [vmem:[%s2427_s10 + $0x2b0] sm:$0xff]  ;;  %v348_v34 = vld [vmem:[%s2427_s10 + $0x2a8] sm:$0xff] }
  0x66   : > { %999 = vmatpush.bf16.msrb.mxu3 %v1945_v32  ;;  %901 = vmatpush.bf16.msrb.mxu0 %v2444_v2  ;;  %v328_v2 = vld [vmem:[%s2427_s10 + $0x208] sm:$0xff] }
  0x67   : > { %968 = vmatmul.bf16.vlgmr.msra.gmra.mxu2 %v391_v35  ;;  %919 = vmatmul.bf16.vlgmr.msra.gmra.mxu1 %v390_v36  ;;  %v405_v9 = vpack.c.bf16 %v328_v2, %v321_v0  ;;  %v272_v32 = vld [vmem:[%s2427_s10 + $0x48] sm:$0xff]  ;;  %v355_v35 = vld [vmem:[%s2427_s10 + $0x2e0] sm:$0xff]  ;;  %v417_v36 = vpack.c.bf16 %v354_v30, %v347_v29 }
  0x68   : > { %1153 = vmatpush.bf16.msrb.mxu2 %v1962_v37  ;;  %1097 = vmatpush.bf16.msrb.mxu1 %v1961_v38  ;;  %v377_v37 = vpack.c.bf16 %v272_v32, %v265_v31  ;;  %v275_v0 = vld [vmem:[%s2427_s10 + $0x60] sm:$0xff] }
  0x6a   : > { %902 = vmatpush.bf16.msrb.mxu0 %v2459_v5  ;;  %1000 = vmatpush.bf16.msrb.mxu3 %v1944_v39  ;;  %v327_v5 = vld [vmem:[%s2427_s10 + $0x200] sm:$0xff]  ;;  %v418_v39 = vpack.c.bf16 %v355_v35, %v348_v34 }
  0x6c   : > { %1098 = vmatpush.bf16.msrb.mxu1 %v1960_v40  ;;  %v1950_v40 = vld [vmem:[%s3027_s1 + $0x120] sm:$0xff] }
  0x6e   : > { %903 = vmatpush.bf16.msrb.mxu0 %v2474_v8  ;;  %1001 = vmatpush.bf16.msrb.mxu3 %v1943_v41  ;;  %v376_v8 = vpack.c.bf16 %v271_v63, %v264_v62  ;;  %v1949_v41 = vld [vmem:[%s3027_s1 + $0x118] sm:$0xff]  ;;  %v276_v62 = vld [vmem:[%s2427_s10 + $0x68] sm:$0xff] }
  0x6f   : > { %v268_v63 = vld [vmem:[%s2427_s10 + $0x28] sm:$0xff] }
  0x70   : > { %1099 = vmatpush.bf16.msrb.mxu1 %v1959_v42  ;;  %v361_v42 = vld [vmem:[%s2427_s10 + $0x310] sm:$0xff] }
  0x72   : > { %904 = vmatpush.bf16.msrb.mxu0 %v2489_v11  ;;  %1002 = vmatpush.bf16.msrb.mxu3 %v1942_v43  ;;  %v404_v11 = vpack.c.bf16 %v327_v5, %v320_v3  ;;  %v368_v43 = vld [vmem:[%s2427_s10 + $0x348] sm:$0xff]  ;;  %v381_v5 = vpack.c.bf16 %v276_v62, %v269_v61 }
  0x73   : > { %v424_v51 = vpack.c.bf16 %v368_v43, %v361_v42  ;;  %v316_v42 = vld [vmem:[%s2427_s10 + $0x1a8] sm:$0xff]  ;;  %v311_v43 = vld [vmem:[%s2427_s10 + $0x180] sm:$0xff] }
  0x74   : > { %1100 = vmatpush.bf16.msrb.mxu1 %v1958_v52  ;;  %v384_v52 = vpack.c.bf16 %v286_v45, %v279_v44  ;;  %v318_v44 = vld [vmem:[%s2427_s10 + $0x1b8] sm:$0xff] }
  0x75   : > { %865 = vmatmul.bf16.gmra.mxu0 %v382_v53  ;;  %875 = vmatmul.bf16.gmra.mxu3 %v396_v54  ;;  %v426_v53 = vpack.c.bf16 %v370_v47, %v363_v46  ;;  %v425_v54 = vpack.c.bf16 %v369_v49, %v362_v48  ;;  %v310_v45 = vld [vmem:[%s2427_s10 + $0x178] sm:$0xff]  ;;  %v317_v46 = vld [vmem:[%s2427_s10 + $0x1b0] sm:$0xff] }
  0x76   : > { %905 = vmatpush.bf16.msrb.mxu0 %v2504_v14  ;;  %1003 = vmatpush.bf16.msrb.mxu3 %v1941_v57  ;;  %v1939_v14 = vld [vmem:[%s3027_s1 + $0xc8] sm:$0xff]  ;;  %v266_v57 = vld [vmem:[%s2427_s10 + $0x18] sm:$0xff] }
  0x77   : > { %973 = vmatmul.bf16.gmra.mxu2 %v398_v55  ;;  %924 = vmatmul.bf16.gmra.mxu1 %v397_v56  ;;  %v1947_v55 = vld [vmem:[%s3027_s1 + $0x108] sm:$0xff]  ;;  %v1946_v56 = vld [vmem:[%s3027_s1 + $0x100] sm:$0xff] }
  0x78   : > { %1101 = vmatpush.bf16.msrb.mxu1 %v1957_v58  ;;  %v273_v58 = vld [vmem:[%s2427_s10 + $0x50] sm:$0xff] }
  0x79   : > { %v378_v2 = vpack.c.bf16 %v273_v58, %v266_v57 }
  0x7a   : > { %906 = vmatpush.bf16.msrb.mxu0 %v2519_v17  ;;  %1004 = vmatpush.bf16.msrb.mxu3 %v1940_v59  ;;  %v278_v17 = vld [vmem:[%s2427_s10 + $0x78] sm:$0xff]  ;;  %v267_v59 = vld [vmem:[%s2427_s10 + $0x20] sm:$0xff] }
  0x7b   : > { %v383_v26 = vpack.c.bf16 %v285_v18, %v278_v17  ;;  %v379_v3 = vpack.c.bf16 %v274_v60, %v267_v59  ;;  %v289_v17 = vld [vmem:[%s2427_s10 + $0xd0] sm:$0xff] }
  0x7c   : > { %1102 = vmatpush.bf16.msrb.mxu1 %v1956_v12  ;;  %v288_v12 = vld [vmem:[%s2427_s10 + $0xc8] sm:$0xff] }
  0x7e   : > { %907 = vmatpush.bf16.msrb.mxu0 %v2534_v20  ;;  %1005 = vmatpush.bf16.msrb.mxu3 %v1939_v14  ;;  %v335_v20 = vld [vmem:[%s2427_s10 + $0x240] sm:$0xff] }
  0x7f   : > { %v412_v27 = vpack.c.bf16 %v342_v21, %v335_v20  ;;  %v283_v14 = vld [vmem:[%s2427_s10 + $0xa0] sm:$0xff] }
  0x82   : > { %908 = vmatpush.bf16.msrb.mxu0 %v2547_v23  ;;  %v334_v23 = vld [vmem:[%s2427_s10 + $0x238] sm:$0xff] }
  0x85   : > { %880 = vmatmul.bf16.gmra.mxu3 %v403_v6  ;;  %909 = vmatmul.bf16.vlgmr.msrb.gmra.mxu0 %v376_v8  ;;  %v380_v6 = vpack.c.bf16 %v275_v0, %v268_v63  ;;  %v280_v8 = vld [vmem:[%s2427_s10 + $0x88] sm:$0xff] }
  0x86   : > { %950 = vmatpush.bf16.msra.mxu0 %v2439_v1  ;;  %v333_v1 = vld [vmem:[%s2427_s10 + $0x230] sm:$0xff] }
  0x87   : > { %978 = vmatmul.bf16.gmra.mxu2 %v405_v9  ;;  %929 = vmatmul.bf16.gmra.mxu1 %v404_v11  ;;  %v410_v25 = vpack.c.bf16 %v340_v15, %v333_v1  ;;  %v287_v9 = vld [vmem:[%s2427_s10 + $0xc0] sm:$0xff]  ;;  %v281_v11 = vld [vmem:[%s2427_s10 + $0x90] sm:$0xff]  ;;  %v290_v1 = vld [vmem:[%s2427_s10 + $0xd8] sm:$0xff] }
  0x88   : > { %v282_v15 = vld [vmem:[%s2427_s10 + $0x98] sm:$0xff]  ;;  %v385_v18 = vpack.c.bf16 %v287_v9, %v280_v8  ;;  %v386_v20 = vpack.c.bf16 %v288_v12, %v281_v11  ;;  %v388_v21 = vpack.c.bf16 %v290_v1, %v283_v14  ;;  %v325_v8 = vld [vmem:[%s2427_s10 + $0x1f0] sm:$0xff]  ;;  %v332_v9 = vld [vmem:[%s2427_s10 + $0x228] sm:$0xff] }
  0x89   : > { %v324_v11 = vld [vmem:[%s2427_s10 + $0x1e8] sm:$0xff]  ;;  %v331_v12 = vld [vmem:[%s2427_s10 + $0x220] sm:$0xff] }
  0x8a   : > { %951 = vmatpush.bf16.msra.mxu0 %v2454_v4  ;;  %v411_v4 = vpack.c.bf16 %v341_v24, %v334_v23  ;;  %v387_v23 = vpack.c.bf16 %v289_v17, %v282_v15  ;;  %v294_v24 = vld [vmem:[%s2427_s10 + $0xf8] sm:$0xff] }
  0x8e   : > { %952 = vmatpush.bf16.msra.mxu0 %v2469_v7  ;;  %v1955_v7 = vld [vmem:[%s3027_s1 + $0x148] sm:$0xff] }
  0x8f   : > { %1103 = vmatpush.bf16.msrb.mxu1 %v1955_v7  ;;  %v304_v7 = vld [vmem:[%s2427_s10 + $0x148] sm:$0xff] }
  0x92   : > { %953 = vmatpush.bf16.msra.mxu0 %v2484_v10  ;;  %v1938_v10 = vld [vmem:[%s3027_s1 + $0xc0] sm:$0xff] }
  0x93   : > { %1006 = vmatpush.bf16.msrb.mxu3 %v1938_v10  ;;  %1104 = vmatpush.bf16.msrb.mxu1 %v1954_v28  ;;  %v296_v10 = vld [vmem:[%s2427_s10 + $0x108] sm:$0xff] }
  0x95   : > { %885 = vmatmul.bf16.gmra.mxu3 %v410_v25  ;;  %914 = vmatmul.bf16.gmra.mxu0 %v383_v26  ;;  %v301_v25 = vld [vmem:[%s2427_s10 + $0x130] sm:$0xff]  ;;  %v295_v26 = vld [vmem:[%s2427_s10 + $0x100] sm:$0xff] }
  0x96   : > { %954 = vmatpush.bf16.msra.mxu0 %v2499_v13  ;;  %v1953_v13 = vld [vmem:[%s3027_s1 + $0x138] sm:$0xff]  ;;  %v392_v28 = vpack.c.bf16 %v301_v25, %v294_v24 }
  0x97   : > { %983 = vmatmul.bf16.gmra.mxu2 %v412_v27  ;;  %934 = vmatmul.bf16.gmra.mxu1 %v411_v4  ;;  %v302_v27 = vld [vmem:[%s2427_s10 + $0x138] sm:$0xff]  ;;  %v297_v4 = vld [vmem:[%s2427_s10 + $0x110] sm:$0xff] }
  0x98   : > { %v393_v29 = vpack.c.bf16 %v302_v27, %v295_v26  ;;  %v395_v31 = vpack.c.bf16 %v304_v7, %v297_v4 }
  0x9a   : > { %955 = vmatpush.bf16.msra.mxu0 %v2514_v16  ;;  %v356_v16 = vld [vmem:[%s2427_s10 + $0x2e8] sm:$0xff] }
  0x9b   : > { %v419_v38 = vpack.c.bf16 %v356_v16, %v349_v33  ;;  %v2723_v16 = vld [vmem:[%s3028_s2] ss:$0 sm:$0xff] }
  0x9e   : > { %956 = vmatpush.bf16.msra.mxu0 %v2529_v19  ;;  %v1952_v19 = vld [vmem:[%s3027_s1 + $0x130] sm:$0xff] }
  0xa2   : > { %957 = vmatpush.bf16.msra.mxu0 %v2542_v22  ;;  %v1951_v22 = vld [vmem:[%s3027_s1 + $0x128] sm:$0xff] }
  0xa5   : > { %890 = vmatmul.bf16.gmra.mxu3 %v417_v36  ;;  %958 = vmatmul.bf16.vlgmr.msra.gmra.mxu0 %v377_v37 }
  0xa6   : > { %1048 = vmatpush.bf16.msrb.mxu0 %v1953_v13  ;;  %v303_v13 = vld [vmem:[%s2427_s10 + $0x140] sm:$0xff] }
  0xa7   : > { %988 = vmatmul.bf16.gmra.mxu2 %v419_v38  ;;  %939 = vmatmul.bf16.gmra.mxu1 %v418_v39  ;;  %v394_v32 = vpack.c.bf16 %v303_v13, %v296_v10 }
  0xaa   : > { %1049 = vmatpush.bf16.msrb.mxu0 %v1952_v19 }
  0xae   : > { %1050 = vmatpush.bf16.msrb.mxu0 %v1951_v22  ;;  %v308_v22 = vld [vmem:[%s2427_s10 + $0x168] sm:$0xff] }
  0xb2   : > { %1051 = vmatpush.bf16.msrb.mxu0 %v1950_v40  ;;  %v315_v40 = vld [vmem:[%s2427_s10 + $0x1a0] sm:$0xff] }
  0xb5   : > { %895 = vmatmul.bf16.gmra.mxu3 %v424_v51  ;;  %963 = vmatmul.bf16.gmra.mxu0 %v384_v52 }
  0xb6   : > { %1052 = vmatpush.bf16.msrb.mxu0 %v1949_v41  ;;  %v309_v41 = vld [vmem:[%s2427_s10 + $0x170] sm:$0xff] }
  0xb7   : > { %993 = vmatmul.bf16.gmra.mxu2 %v426_v53  ;;  %944 = vmatmul.bf16.gmra.mxu1 %v425_v54  ;;  %v400_v51 = vpack.c.bf16 %v316_v42, %v309_v41  ;;  %v402_v53 = vpack.c.bf16 %v318_v44, %v311_v43  ;;  %v401_v54 = vpack.c.bf16 %v317_v46, %v310_v45 }
  0xba   : > { %1053 = vmatpush.bf16.msrb.mxu0 %v1948_v50  ;;  %v399_v50 = vpack.c.bf16 %v315_v40, %v308_v22 }
  0xbe   : > { %1054 = vmatpush.bf16.msrb.mxu0 %v1947_v55 }
  0xc2   : > { %1055 = vmatpush.bf16.msrb.mxu0 %v1946_v56 }
  0xc5   : > { %1007 = vmatmul.bf16.vlgmr.msrb.gmra.mxu3 %v378_v2  ;;  %1056 = vmatmul.bf16.vlgmr.msrb.gmra.mxu0 %v379_v3  ;;  %v322_v2 = vld [vmem:[%s2427_s10 + $0x1d8] sm:$0xff]  ;;  %v329_v3 = vld [vmem:[%s2427_s10 + $0x210] sm:$0xff] }
  0xc6   : > { %v406_v17 = vpack.c.bf16 %v329_v3, %v322_v2  ;;  %v353_v2 = vld [vmem:[%s2427_s10 + $0x2d0] sm:$0xff]  ;;  %v360_v3 = vld [vmem:[%s2427_s10 + $0x308] sm:$0xff] }
  0xc7   : > { %1889 = vmatmul.msk.bf16.vlgmr.msrb.gmra.mxu2 %vm827_vm0, %v381_v5  ;;  %1105 = vmatmul.bf16.vlgmr.msrb.gmra.mxu1 %v380_v6  ;;  %v323_v5 = vld [vmem:[%s2427_s10 + $0x1e0] sm:$0xff]  ;;  %v330_v6 = vld [vmem:[%s2427_s10 + $0x218] sm:$0xff] }
  0xd5   : > { %1012 = vmatmul.bf16.gmra.mxu3 %v385_v18  ;;  %1061 = vmatmul.bf16.gmra.mxu0 %v386_v20  ;;  %v407_v18 = vpack.c.bf16 %v330_v6, %v323_v5  ;;  %v352_v5 = vld [vmem:[%s2427_s10 + $0x2c8] sm:$0xff]  ;;  %v359_v6 = vld [vmem:[%s2427_s10 + $0x300] sm:$0xff] }
  0xd7   : > { %1890 = vmatmul.msk.bf16.gmra.mxu2 %vm827_vm0, %v388_v21  ;;  %1110 = vmatmul.bf16.gmra.mxu1 %v387_v23  ;;  %v409_v21 = vpack.c.bf16 %v332_v9, %v325_v8  ;;  %v408_v23 = vpack.c.bf16 %v331_v12, %v324_v11 }
  0xe2   : > { %v2718_v30 = vpop.f32.mrf.mxu0 }
  0xe4   : > { %v920_v33 = vpop.f32.mrf.mxu1 }
  0xe5   : > { %1017 = vmatmul.bf16.gmra.mxu3 %v392_v28  ;;  %1066 = vmatmul.bf16.gmra.mxu0 %v393_v29 }
  0xe7   : > { %1891 = vmatmul.msk.bf16.gmra.mxu2 %vm827_vm0, %v395_v31  ;;  %1115 = vmatmul.bf16.gmra.mxu1 %v394_v32  ;;  %v336_v31 = vld [vmem:[%s2427_s10 + $0x248] sm:$0xff]  ;;  %v343_v32 = vld [vmem:[%s2427_s10 + $0x280] sm:$0xff] }
  0xe8   : > { %v871_v34 = vpop.f32.mrf.mxu3  ;;  %v413_v42 = vpack.c.bf16 %v343_v32, %v336_v31  ;;  %v364_v31 = vld [vmem:[%s2427_s10 + $0x328] sm:$0xff]  ;;  %v371_v32 = vld [vmem:[%s2427_s10 + $0x360] sm:$0xff] }
  0xe9   : > { %v872_v35 = vadd.f32 %v2723_v16, %v871_v34  ;;  %v344_v34 = vld [vmem:[%s2427_s10 + $0x288] sm:$0xff] }
  0xea   : > { %v969_v19 = vpop.f32.mrf.mxu2  ;;  %v2727_v36 = vpop.f32.mrf.mxu0 }
  0xeb   : > { %v921_v37 = vadd.f32 %v920_v33, %v872_v35  ;;  %v337_v33 = vld [vmem:[%s2427_s10 + $0x250] sm:$0xff]  ;;  %v339_v35 = vld [vmem:[%s2427_s10 + $0x260] sm:$0xff] }
  0xec   : > { %v922_v38 = vpop.f32.mrf.mxu1  ;;  %v414_v43 = vpack.c.bf16 %v344_v34, %v337_v33  ;;  %v365_v33 = vld [vmem:[%s2427_s10 + $0x330] sm:$0xff]  ;;  %v372_v34 = vld [vmem:[%s2427_s10 + $0x368] sm:$0xff] }
  0xed   : > { %v2729_v39 = vadd.f32 %v969_v19, %v921_v37  ;;  %v346_v19 = vld [vmem:[%s2427_s10 + $0x298] sm:$0xff] }
  0xee   : > { %v338_v37 = vld [vmem:[%s2427_s10 + $0x258] sm:$0xff]  ;;  %v416_v45 = vpack.c.bf16 %v346_v19, %v339_v35  ;;  %v367_v35 = vld [vmem:[%s2427_s10 + $0x340] sm:$0xff] }
  0xef   : > { %v374_v19 = vld [vmem:[%s2427_s10 + $0x378] sm:$0xff] }
  0xf0   : > { %v873_v47 = vpop.f32.mrf.mxu3 }
  0xf1   : > { %v874_v48 = vadd.f32 %v2723_v16, %v873_v47 }
  0xf2   : > { %v971_v49 = vpop.f32.mrf.mxu2  ;;  %v2740_v52 = vpop.f32.mrf.mxu0 }
  0xf3   : > { %v923_v55 = vadd.f32 %v922_v38, %v874_v48  ;;  %v345_v38 = vld [vmem:[%s2427_s10 + $0x290] sm:$0xff] }
  0xf4   : > { %v925_v56 = vpop.f32.mrf.mxu1  ;;  %v415_v46 = vpack.c.bf16 %v345_v38, %v338_v37  ;;  %v366_v37 = vld [vmem:[%s2427_s10 + $0x338] sm:$0xff]  ;;  %v373_v38 = vld [vmem:[%s2427_s10 + $0x370] sm:$0xff] }
  0xf5   : > { %v2742_v57 = vadd.f32 %v971_v49, %v923_v55  ;;  %1022 = vmatmul.bf16.gmra.mxu3 %v399_v50  ;;  %1071 = vmatmul.bf16.gmra.mxu0 %v400_v51 }
  0xf7   : > { %1892 = vmatmul.msk.bf16.gmra.mxu2 %vm827_vm0, %v402_v53  ;;  %1120 = vmatmul.bf16.gmra.mxu1 %v401_v54 }
  0xf8   : > { %v876_v58 = vpop.f32.mrf.mxu3 }
  0xf9   : > { %v877_v59 = vadd.f32 %v2723_v16, %v876_v58 }
  0xfa   : > { %v974_v60 = vpop.f32.mrf.mxu2  ;;  %v2746_v61 = vpop.f32.mrf.mxu0 }
  0xfb   : > { %v926_v62 = vadd.f32 %v925_v56, %v877_v59  ;;  %v350_v59 = vld [vmem:[%s2427_s10 + $0x2b8] sm:$0xff] }
  0xfc   : > { %v927_v63 = vpop.f32.mrf.mxu1 }
  0xfd   : > { %v2748_v0 = vadd.f32 %v974_v60, %v926_v62  ;;  %v357_v60 = vld [vmem:[%s2427_s10 + $0x2f0] sm:$0xff]  ;;  %v351_v62 = vld [vmem:[%s2427_s10 + $0x2c0] sm:$0xff] }
  0xfe   : > { %v420_v12 = vpack.c.bf16 %v357_v60, %v350_v59 }
 0x100   : > { %v878_v14 = vpop.f32.mrf.mxu3 }
 0x101   : > { %v879_v1 = vadd.f32 %v2723_v16, %v878_v14 }
 0x102   : > { %v976_v15 = vpop.f32.mrf.mxu2  ;;  %v2759_v20 = vpop.f32.mrf.mxu0 }
 0x103   : > { %v928_v24 = vadd.f32 %v927_v63, %v879_v1  ;;  %v358_v63 = vld [vmem:[%s2427_s10 + $0x2f8] sm:$0xff] }
 0x104   : > { %v930_v25 = vpop.f32.mrf.mxu1  ;;  %v421_v14 = vpack.c.bf16 %v358_v63, %v351_v62 }
 0x105   : > { %v2761_v26 = vadd.f32 %v976_v15, %v928_v24  ;;  %1027 = vmatmul.bf16.gmra.mxu3 %v406_v17  ;;  %1076 = vmatmul.bf16.gmra.mxu0 %v407_v18  ;;  %v423_v15 = vpack.c.bf16 %v360_v3, %v353_v2  ;;  %v422_v17 = vpack.c.bf16 %v359_v6, %v352_v5 }
 0x107   : > { %1893 = vmatmul.msk.bf16.gmra.mxu2 %vm827_vm0, %v409_v21  ;;  %1125 = vmatmul.bf16.gmra.mxu1 %v408_v23 }
 0x108   : > { %v881_v27 = vpop.f32.mrf.mxu3 }
 0x109   : > { %v882_v4 = vadd.f32 %v2723_v16, %v881_v27 }
 0x10a   : > { %v979_v7 = vpop.f32.mrf.mxu2  ;;  %v2765_v10 = vpop.f32.mrf.mxu0 }
 0x10b   : > { %v931_v13 = vadd.f32 %v930_v25, %v882_v4 }
 0x10c   : > { %v932_v28 = vpop.f32.mrf.mxu1 }
 0x10d   : > { %v2767_v29 = vadd.f32 %v979_v7, %v931_v13 }
 0x110   : > { %v883_v22 = vpop.f32.mrf.mxu3 }
 0x111   : > { %v884_v40 = vadd.f32 %v2723_v16, %v883_v22 }
 0x112   : > { %v981_v41 = vpop.f32.mrf.mxu2  ;;  %v2778_v44 = vpop.f32.mrf.mxu0 }
 0x113   : > { %v933_v47 = vadd.f32 %v932_v28, %v884_v40 }
 0x114   : > { %v935_v48 = vpop.f32.mrf.mxu1 }
 0x115   : > { %v2780_v49 = vadd.f32 %v981_v41, %v933_v47  ;;  %1032 = vmatmul.bf16.gmra.mxu3 %v413_v42  ;;  %1081 = vmatmul.bf16.gmra.mxu0 %v414_v43  ;;  %v427_v42 = vpack.c.bf16 %v371_v32, %v364_v31  ;;  %v428_v43 = vpack.c.bf16 %v372_v34, %v365_v33 }
 0x116   : > { %v429_v47 = vpack.c.bf16 %v373_v38, %v366_v37 }
 0x117   : > { %1894 = vmatmul.msk.bf16.gmra.mxu2 %vm827_vm0, %v416_v45  ;;  %1130 = vmatmul.bf16.gmra.mxu1 %v415_v46  ;;  %v430_v46 = vpack.c.bf16 %v374_v19, %v367_v35 }
 0x118   : > { %v886_v50 = vpop.f32.mrf.mxu3 }
 0x119   : > { %v887_v51 = vadd.f32 %v2723_v16, %v886_v50 }
 0x11a   : > { %v984_v53 = vpop.f32.mrf.mxu2  ;;  %v2784_v54 = vpop.f32.mrf.mxu0 }
 0x11b   : > { %v936_v55 = vadd.f32 %v935_v48, %v887_v51 }
 0x11c   : > { %v937_v56 = vpop.f32.mrf.mxu1 }
 0x11d   : > { %v2786_v58 = vadd.f32 %v984_v53, %v936_v55 }
 0x120   : > { %v888_v8 = vpop.f32.mrf.mxu3 }
 0x121   : > { %v889_v9 = vadd.f32 %v2723_v16, %v888_v8  ;;  %v862_v8 = vadd.f32 %v2723_v16, %v2718_v30 }
 0x122   : > { %v986_v11 = vpop.f32.mrf.mxu2  ;;  %v959_v1 = vpop.f32.mrf.mxu0 }
 0x123   : > { %v938_v18 = vadd.f32 %v937_v56, %v889_v9 }
 0x124   : > { %v940_v21 = vpop.f32.mrf.mxu1 }
 0x125   : > { %v2797_v23 = vadd.f32 %v986_v11, %v938_v18  ;;  %1037 = vmatmul.bf16.gmra.mxu3 %v420_v12  ;;  %1086 = vmatmul.bf16.gmra.mxu0 %v421_v14  ;;  %v911_v12 = vadd.f32 %v2759_v20, %v862_v8 }
 0x127   : > { %1895 = vmatmul.msk.bf16.gmra.mxu2 %vm827_vm0, %v423_v15  ;;  %1135 = vmatmul.bf16.gmra.mxu1 %v422_v17  ;;  %v960_v15 = vadd.f32 %v959_v1, %v911_v12  ;;  %v2830_v1 = vld [vmem:[%s3029_s3] ss:$0 sm:$0xff] }
 0x128   : > { %v891_v24 = vpop.f32.mrf.mxu3 }
 0x129   : > { %v892_v25 = vadd.f32 %v2723_v16, %v891_v24 }
 0x12a   : > { %v989_v27 = vpop.f32.mrf.mxu2  ;;  %v961_v4 = vpop.f32.mrf.mxu0 }
 0x12b   : > { %v941_v7 = vadd.f32 %v940_v21, %v892_v25  ;;  %v864_v25 = vadd.f32 %v2723_v16, %v2727_v36  ;;  %v867_v36 = vadd.f32 %v2723_v16, %v2740_v52 }
 0x12c   : > { %v942_v13 = vpop.f32.mrf.mxu1 }
 0x12d   : > { %v2801_v28 = vadd.f32 %v989_v27, %v941_v7 }
 0x130   : > { %v893_v22 = vpop.f32.mrf.mxu3 }
 0x131   : > { %v894_v40 = vadd.f32 %v2723_v16, %v893_v22 }
 0x132   : > { %v991_v41 = vpop.f32.mrf.mxu2  ;;  %v964_v45 = vpop.f32.mrf.mxu0 }
 0x133   : > { %v943_v48 = vadd.f32 %v942_v13, %v894_v40  ;;  %v913_v13 = vadd.f32 %v2765_v10, %v864_v25  ;;  %v916_v10 = vadd.f32 %v2778_v44, %v867_v36 }
 0x134   : > { %v945_v50 = vpop.f32.mrf.mxu1 }
 0x135   : > { %v2812_v51 = vadd.f32 %v991_v41, %v943_v48  ;;  %1042 = vmatmul.bf16.gmra.mxu3 %v427_v42  ;;  %1091 = vmatmul.bf16.gmra.mxu0 %v428_v43  ;;  %v962_v30 = vadd.f32 %v961_v4, %v913_v13  ;;  %v965_v41 = vadd.f32 %v964_v45, %v916_v10 }
 0x137   : > { %1896 = vmatmul.msk.bf16.gmra.mxu2 %vm827_vm0, %v430_v46  ;;  %1140 = vmatmul.bf16.gmra.mxu1 %v429_v47 }
 0x138   : > { %v896_v53 = vpop.f32.mrf.mxu3 }
 0x139   : > { %v897_v55 = vadd.f32 %v2723_v16, %v896_v53  ;;  %v869_v53 = vadd.f32 %v2723_v16, %v2746_v61 }
 0x13a   : > { %v994_v56 = vpop.f32.mrf.mxu2  ;;  %v966_v59 = vpop.f32.mrf.mxu0 }
 0x13b   : > { %v946_v60 = vadd.f32 %v945_v50, %v897_v55 }
 0x13c   : > { %v947_v62 = vpop.f32.mrf.mxu1 }
 0x13d   : > { %v2816_v63 = vadd.f32 %v994_v56, %v946_v60  ;;  %v918_v60 = vadd.f32 %v2784_v54, %v869_v53 }
 0x140   : > { %v898_v2 = vpop.f32.mrf.mxu3 }
 0x141   : > { %v899_v3 = vadd.f32 %v2723_v16, %v898_v2  ;;  %v967_v2 = vadd.f32 %v966_v59, %v918_v60 }
 0x142   : > { %v996_v5 = vpop.f32.mrf.mxu2  ;;  %v1057_v6 = vpop.f32.mrf.mxu0 }
 0x143   : > { %v948_v9 = vadd.f32 %v947_v62, %v899_v3 }
 0x144   : > { %v1106_v11 = vpop.f32.mrf.mxu1 }
 0x145   : > { %v2822_v14 = vadd.f32 %v996_v5, %v948_v9 }
 0x148   : > { %v1008_v17 = vpop.f32.mrf.mxu3 }
 0x149   : > { %v1009_v18 = vadd.f32 %v1008_v17, %v960_v15 }
 0x14a   : > { %v1155_v21 = vpop.f32.mrf.mxu2  ;;  %v1059_v24 = vpop.f32.mrf.mxu0 }
 0x14b   : > { %v1058_v27 = vadd.f32 %v1057_v6, %v1009_v18 }
 0x14c   : > { %v1108_v7 = vpop.f32.mrf.mxu1 }
 0x14d   : > { %v1107_v31 = vadd.f32 %v1106_v11, %v1058_v27 }
 0x14f   : > { %v1156_v32 = vadd.f32 %v1155_v21, %v1107_v31 }
 0x150   : > { %v1010_v33 = vpop.f32.mrf.mxu3 }
 0x151   : > { %v1195_v34 = vmul.f32 0.1, %v1156_v32  ;;  %v1011_v20 = vadd.f32 %v1010_v33, %v962_v30 }
 0x152   : > { %v1157_v35 = vpop.f32.mrf.mxu2  ;;  %v1062_v19 = vpop.f32.mrf.mxu0 }
 0x153   : > { %v1060_v37 = vadd.f32 %v1059_v24, %v1011_v20  ;;  %v1211_v22 = vmax.f32 %v1156_v32, %v1195_v34 }
 0x154   : > { %v1111_v38 = vpop.f32.mrf.mxu1 }
 0x155   : > { %v1109_v4 = vadd.f32 %v1108_v7, %v1060_v37  ;;  %v1231_v40 = vmul.f32 %v2830_v1, %v1211_v22 }
 0x157   : > { %v1158_v42 = vadd.f32 %v1157_v35, %v1109_v4  ;;  %1247 = vadd.xlane.f32.xlu0 %v1231_v40 }
 0x158   : > { %v1013_v43 = vpop.f32.mrf.mxu3 }
 0x159   : > { %v1196_v46 = vmul.f32 0.1, %v1158_v42  ;;  %v1014_v47 = vadd.f32 %v1013_v43, %v965_v41 }
 0x15a   : > { %v1160_v48 = vpop.f32.mrf.mxu2  ;;  %v1064_v50 = vpop.f32.mrf.mxu0 }
 0x15b   : > { %v1212_v52 = vmax.f32 %v1158_v42, %v1196_v46  ;;  %v1063_v55 = vadd.f32 %v1062_v19, %v1014_v47 }
 0x15c   : > { %v1113_v56 = vpop.f32.mrf.mxu1 }
 0x15d   : > { %v1112_v44 = vadd.f32 %v1111_v38, %v1063_v55  ;;  %v1232_v62 = vmul.f32 %v2830_v1, %v1212_v52 }
 0x15f   : > { %v1161_v45 = vadd.f32 %v1160_v48, %v1112_v44  ;;  %1249 = vadd.xlane.f32.xlu0 %v1232_v62 }
 0x160   : > { %v1015_v3 = vpop.f32.mrf.mxu3 }
 0x161   : > { %v1197_v5 = vmul.f32 0.1, %v1161_v45  ;;  %v1016_v6 = vadd.f32 %v1015_v3, %v967_v2 }
 0x162   : > { %v1162_v8 = vpop.f32.mrf.mxu2  ;;  %v1067_v9 = vpop.f32.mrf.mxu0 }
 0x163   : > { %v1065_v11 = vadd.f32 %v1064_v50, %v1016_v6  ;;  %v1213_v15 = vmax.f32 %v1161_v45, %v1197_v5 }
 0x164   : > { %v1116_v12 = vpop.f32.mrf.mxu1 }
 0x165   : > { %v1114_v16 = vadd.f32 %v1113_v56, %v1065_v11  ;;  %v1233_v61 = vmul.f32 %v2830_v1, %v1213_v15 }
 0x167   : > { %v1163_v17 = vadd.f32 %v1162_v8, %v1114_v16  ;;  %1251 = vadd.xlane.f32.xlu1 %v1233_v61 }
 0x168   : > { %v1018_v54 = vpop.f32.mrf.mxu3 }
 0x169   : > { %v1198_v18 = vmul.f32 0.1, %v1163_v17  ;;  %v1019_v21 = vadd.f32 %v1018_v54, %v2729_v39 }
 0x16a   : > { %v1165_v59 = vpop.f32.mrf.mxu2  ;;  %v1069_v24 = vpop.f32.mrf.mxu0 }
 0x16b   : > { %v1214_v25 = vmax.f32 %v1163_v17, %v1198_v18  ;;  %v1068_v27 = vadd.f32 %v1067_v9, %v1019_v21 }
 0x16c   : > { %v1118_v7 = vpop.f32.mrf.mxu1 }
 0x16d   : > { %v1117_v13 = vadd.f32 %v1116_v12, %v1068_v27  ;;  %v1234_v31 = vmul.f32 %v2830_v1, %v1214_v25 }
 0x16f   : > { %v1166_v30 = vadd.f32 %v1165_v59, %v1117_v13  ;;  %1253 = vadd.xlane.f32.xlu1 %v1234_v31 }
 0x170   : > { %v1020_v32 = vpop.f32.mrf.mxu3 }
 0x171   : > { %v1199_v33 = vmul.f32 0.1, %v1166_v30  ;;  %v1021_v34 = vadd.f32 %v1020_v32, %v2742_v57 }
 0x172   : > { %v1167_v20 = vpop.f32.mrf.mxu2  ;;  %v1072_v35 = vpop.f32.mrf.mxu0 }
 0x173   : > { %v1070_v19 = vadd.f32 %v1069_v24, %v1021_v34  ;;  %v1215_v37 = vmax.f32 %v1166_v30, %v1199_v33 }
 0x174   : > { %v1121_v36 = vpop.f32.mrf.mxu1 }
 0x175   : > { %v1119_v39 = vadd.f32 %v1118_v7, %v1070_v19  ;;  %v1235_v38 = vmul.f32 %v2830_v1, %v1215_v37 }
 0x177   : > { %v1168_v22 = vadd.f32 %v1167_v20, %v1119_v39  ;;  %1255 = vadd.xlane.f32.xlu2 %v1235_v38 }
 0x178   : > { %v1023_v10 = vpop.f32.mrf.mxu3 }
 0x179   : > { %v1200_v4 = vmul.f32 0.1, %v1168_v22  ;;  %v1024_v40 = vadd.f32 %v1023_v10, %v2748_v0 }
 0x17a   : > { %v1170_v41 = vpop.f32.mrf.mxu2  ;;  %v1074_v42 = vpop.f32.mrf.mxu0 }
 0x17b   : > { %v1216_v43 = vmax.f32 %v1168_v22, %v1200_v4  ;;  %v1073_v46 = vadd.f32 %v1072_v35, %v1024_v40 }
 0x17c   : > { %v1123_v47 = vpop.f32.mrf.mxu1 }
 0x17d   : > { %v1122_v57 = vadd.f32 %v1121_v36, %v1073_v46  ;;  %v1236_v48 = vmul.f32 %v2830_v1, %v1216_v43 }
 0x17f   : > { %v1171_v50 = vadd.f32 %v1170_v41, %v1122_v57  ;;  %1257 = vadd.xlane.f32.xlu2 %v1236_v48 }
 0x180   : > { %v1025_v53 = vpop.f32.mrf.mxu3 }
 0x181   : > { %v1201_v52 = vmul.f32 0.1, %v1171_v50  ;;  %v1026_v55 = vadd.f32 %v1025_v53, %v2761_v26 }
 0x182   : > { %v1172_v56 = vpop.f32.mrf.mxu2  ;;  %v1077_v60 = vpop.f32.mrf.mxu0 }
 0x183   : > { %v1217_v44 = vmax.f32 %v1171_v50, %v1201_v52  ;;  %v1075_v62 = vadd.f32 %v1074_v42, %v1026_v55 }
 0x184   : > { %v1126_v2 = vpop.f32.mrf.mxu1 }
 0x185   : > { %v1124_v0 = vadd.f32 %v1123_v47, %v1075_v62  ;;  %v1237_v45 = vmul.f32 %v2830_v1, %v1217_v44 }
 0x187   : > { %v1173_v3 = vadd.f32 %v1172_v56, %v1124_v0  ;;  %1259 = vadd.xlane.f32.xlu0 %v1237_v45 }
 0x188   : > { %v1028_v5 = vpop.f32.mrf.mxu3 }
 0x189   : > { %v1202_v6 = vmul.f32 0.1, %v1173_v3  ;;  %v1029_v8 = vadd.f32 %v1028_v5, %v2767_v29 }
 0x18a   : > { %v1175_v9 = vpop.f32.mrf.mxu2  ;;  %v1079_v11 = vpop.f32.mrf.mxu0 }
 0x18b   : > { %v1218_v12 = vmax.f32 %v1173_v3, %v1202_v6  ;;  %v1078_v15 = vadd.f32 %v1077_v60, %v1029_v8 }
 0x18c   : > { %v1128_v16 = vpop.f32.mrf.mxu1 }
 0x18d   : > { %v1127_v26 = vadd.f32 %v1126_v2, %v1078_v15  ;;  %v1238_v61 = vmul.f32 %v2830_v1, %v1218_v12 }
 0x18f   : > { %v1176_v17 = vadd.f32 %v1175_v9, %v1127_v26  ;;  %1261 = vadd.xlane.f32.xlu1 %v1238_v61 }
 0x190   : > { %v1030_v54 = vpop.f32.mrf.mxu3 }
 0x191   : > { %v1203_v18 = vmul.f32 0.1, %v1176_v17  ;;  %v1031_v21 = vadd.f32 %v1030_v54, %v2780_v49 }
 0x192   : > { %v1177_v59 = vpop.f32.mrf.mxu2  ;;  %v1082_v24 = vpop.f32.mrf.mxu0 }
 0x193   : > { %v1219_v25 = vmax.f32 %v1176_v17, %v1203_v18  ;;  %v1080_v27 = vadd.f32 %v1079_v11, %v1031_v21 }
 0x194   : > { %v1131_v7 = vpop.f32.mrf.mxu1 }
 0x195   : > { %v1129_v29 = vadd.f32 %v1128_v16, %v1080_v27  ;;  %v1239_v13 = vmul.f32 %v2830_v1, %v1219_v25 }
 0x197   : > { %v1178_v31 = vadd.f32 %v1177_v59, %v1129_v29  ;;  %1263 = vadd.xlane.f32.xlu2 %v1239_v13 }
 0x198   : > { %v1033_v30 = vpop.f32.mrf.mxu3 }
 0x199   : > { %v1204_v32 = vmul.f32 0.1, %v1178_v31  ;;  %v1034_v33 = vadd.f32 %v1033_v30, %v2786_v58 }
 0x19a   : > { %v1180_v34 = vpop.f32.mrf.mxu2  ;;  %v1084_v20 = vpop.f32.mrf.mxu0 }
 0x19b   : > { %v1220_v35 = vmax.f32 %v1178_v31, %v1204_v32  ;;  %v1083_v19 = vadd.f32 %v1082_v24, %v1034_v33  ;;  %v2865_v33 = vstv %s1279_s19 }
 0x19c   : > { %v1133_v36 = vpop.f32.mrf.mxu1 }
 0x19d   : > { %v1132_v49 = vadd.f32 %v1131_v7, %v1083_v19  ;;  %v1240_v37 = vmul.f32 %v2830_v1, %v1220_v35 }
 0x19f   : > { %v1181_v39 = vadd.f32 %v1180_v34, %v1132_v49  ;;  %1265 = vadd.xlane.f32.xlu0 %v1240_v37 }
 0x1a0   : > { %v1035_v38 = vpop.f32.mrf.mxu3 }
 0x1a1   : > { %v1205_v22 = vmul.f32 0.1, %v1181_v39  ;;  %v1036_v10 = vadd.f32 %v1035_v38, %v2797_v23 }
 0x1a2   : > { %v1182_v4 = vpop.f32.mrf.mxu2  ;;  %v1087_v42 = vpop.f32.mrf.mxu0 }
 0x1a3   : > { %v1221_v40 = vmax.f32 %v1181_v39, %v1205_v22  ;;  %v1085_v41 = vadd.f32 %v1084_v20, %v1036_v10 }
 0x1a4   : > { %v1136_v46 = vpop.f32.mrf.mxu1 }
 0x1a5   : > { %v1134_v43 = vadd.f32 %v1133_v36, %v1085_v41  ;;  %v1241_v58 = vmul.f32 %v2830_v1, %v1221_v40 }
 0x1a7   : > { %v1183_v47 = vadd.f32 %v1182_v4, %v1134_v43  ;;  %1267 = vadd.xlane.f32.xlu1 %v1241_v58 }
 0x1a8   : > { %v1038_v57 = vpop.f32.mrf.mxu3 }
 0x1a9   : > { %v1206_v48 = vmul.f32 0.1, %v1183_v47  ;;  %v1039_v50 = vadd.f32 %v1038_v57, %v2801_v28 }
 0x1aa   : > { %v1185_v53 = vpop.f32.mrf.mxu2  ;;  %v1089_v60 = vpop.f32.mrf.mxu0 }
 0x1ab   : > { %v1222_v52 = vmax.f32 %v1183_v47, %v1206_v48  ;;  %v1088_v55 = vadd.f32 %v1087_v42, %v1039_v50 }
 0x1ac   : > { %v1138_v62 = vpop.f32.mrf.mxu1 }
 0x1ad   : > { %v1137_v56 = vadd.f32 %v1136_v46, %v1088_v55  ;;  %v1242_v23 = vmul.f32 %v2830_v1, %v1222_v52 }
 0x1af   : > { %v1186_v44 = vadd.f32 %v1185_v53, %v1137_v56  ;;  %1269 = vadd.xlane.f32.xlu2 %v1242_v23 }
 0x1b0   : > { %v1040_v2 = vpop.f32.mrf.mxu3 }
 0x1b1   : > { %v1207_v0 = vmul.f32 0.1, %v1186_v44  ;;  %v1041_v45 = vadd.f32 %v1040_v2, %v2812_v51 }
 0x1b2   : > { %v1187_v3 = vpop.f32.mrf.mxu2  ;;  %v1092_v11 = vpop.f32.mrf.mxu0 }
 0x1b3   : > { %v1223_v5 = vmax.f32 %v1186_v44, %v1207_v0  ;;  %v1090_v6 = vadd.f32 %v1089_v60, %v1041_v45 }
 0x1b4   : > { %v1141_v26 = vpop.f32.mrf.mxu1 }
 0x1b5   : > { %v1139_v8 = vadd.f32 %v1138_v62, %v1090_v6  ;;  %v1243_v28 = vmul.f32 %v2830_v1, %v1223_v5 }
 0x1b7   : > { %v1188_v9 = vadd.f32 %v1187_v3, %v1139_v8  ;;  %1271 = vadd.xlane.f32.xlu0 %v1243_v28 }
 0x1b8   : > { %v1043_v12 = vpop.f32.mrf.mxu3 }
 0x1b9   : > { %v1208_v15 = vmul.f32 0.1, %v1188_v9  ;;  %v1044_v16 = vadd.f32 %v1043_v12, %v2816_v63 }
 0x1ba   : > { %v1190_v54 = vpop.f32.mrf.mxu2  ;;  %v1094_v27 = vpop.f32.mrf.mxu0 }
 0x1bb   : > { %v1224_v61 = vmax.f32 %v1188_v9, %v1208_v15  ;;  %v1093_v17 = vadd.f32 %v1092_v11, %v1044_v16 }
 0x1bc   : > { %v1143_v13 = vpop.f32.mrf.mxu1 }
 0x1bd   : > { %v1142_v18 = vadd.f32 %v1141_v26, %v1093_v17  ;;  %v1244_v51 = vmul.f32 %v2830_v1, %v1224_v61 }
 0x1bf   : > { %v1191_v21 = vadd.f32 %v1190_v54, %v1142_v18  ;;  %1273 = vadd.xlane.f32.xlu1 %v1244_v51 }
 0x1c0   : > { %v1045_v59 = vpop.f32.mrf.mxu3 }
 0x1c1   : > { %v1209_v24 = vmul.f32 0.1, %v1191_v21  ;;  %v1046_v25 = vadd.f32 %v1045_v59, %v2822_v14 }
 0x1c2   : > { %v1192_v30 = vpop.f32.mrf.mxu2 }
 0x1c3   : > { %v1225_v7 = vmax.f32 %v1191_v21, %v1209_v24  ;;  %v1095_v29 = vadd.f32 %v1094_v27, %v1046_v25 }
 0x1c5   : > { %v1144_v31 = vadd.f32 %v1143_v13, %v1095_v29  ;;  %v1245_v63 = vmul.f32 %v2830_v1, %v1225_v7 }
 0x1c7   : > { %v1193_v32 = vadd.f32 %v1192_v30, %v1144_v31  ;;  %1275 = vadd.xlane.f32.xlu2 %v1245_v63 }
 0x1c9   : > { %v1210_v34 = vmul.f32 0.1, %v1193_v32 }
 0x1ca   : > { %v1248_v20 = vpop.xlane.xlu0 %1247 }
 0x1cb   : > { %v1226_v35 = vmax.f32 %v1193_v32, %v1210_v34  ;;  %v1281_v19 = vadd.f32 %v2865_v33, %v1248_v20 }
 0x1cd   : > { %v1297_v36 = vsub.f32 0.0, %v1281_v19  ;;  %v1246_v14 = vmul.f32 %v2830_v1, %v1226_v35 }
 0x1cf   : > { %v1313_v49 = vmul.f32 1.442695, %v1297_v36  ;;  %1277 = vadd.xlane.f32.xlu0 %v1246_v14 }
 0x1d1   : > { %2094 = vpow2.f32 %v1313_v49 }
 0x1d2   : > { %v1250_v37 = vpop.xlane.xlu0 %1249 }
 0x1d3   : > { %v1282_v39 = vadd.f32 %v2865_v33, %v1250_v37 }
 0x1d5   : > { %v1298_v38 = vsub.f32 0.0, %v1282_v39 }
 0x1d7   : > { %v2095_v22 = vpop.eup %2094  ;;  %v1315_v10 = vmul.f32 1.442695, %v1298_v38 }
 0x1d8   : > { %v1345_v4 = vadd.f32 1.0, %v2095_v22 }
 0x1d9   : > { %2096 = vpow2.f32 %v1315_v10 }
 0x1da   : > { %2098 = vrcp.f32 %v1345_v4  ;;  %v1252_v40 = vpop.xlane.xlu1 %1251 }
 0x1db   : > { %v1283_v41 = vadd.f32 %v2865_v33, %v1252_v40 }
 0x1dd   : > { %v1299_v42 = vsub.f32 0.0, %v1283_v41 }
 0x1df   : > { %v2097_v43 = vpop.eup %2096  ;;  %v1317_v1 = vmul.f32 1.442695, %v1299_v42 }
 0x1e0   : > { %v2099_v58 = vpop.eup %2098  ;;  %v1346_v46 = vadd.f32 1.0, %v2097_v43 }
 0x1e1   : > { %1378 = vst.msk [vmem:[%s2872_s30] sm:$0xff] %vm1377_vm1, %v2099_v58  ;;  %2100 = vpow2.f32 %v1317_v1 }
 0x1e2   : > { %2102 = vrcp.f32 %v1346_v46  ;;  %v1254_v47 = vpop.xlane.xlu1 %1253 }
 0x1e3   : > { %v1284_v57 = vadd.f32 %v2865_v33, %v1254_v47 }
 0x1e5   : > { %v1300_v48 = vsub.f32 0.0, %v1284_v57 }
 0x1e7   : > { %v2101_v50 = vpop.eup %2100  ;;  %v1319_v53 = vmul.f32 1.442695, %v1300_v48 }
 0x1e8   : > { %v2103_v52 = vpop.eup %2102  ;;  %v1347_v55 = vadd.f32 1.0, %v2101_v50 }
 0x1e9   : > { %1379 = vst.msk [vmem:[%s2872_s30 + $0x8] sm:$0xff] %vm1377_vm1, %v2103_v52  ;;  %2104 = vpow2.f32 %v1319_v53 }
 0x1ea   : > { %2106 = vrcp.f32 %v1347_v55  ;;  %v1256_v56 = vpop.xlane.xlu2 %1255 }
 0x1eb   : > { %v1285_v23 = vadd.f32 %v2865_v33, %v1256_v56 }
 0x1ed   : > { %v1301_v60 = vsub.f32 0.0, %v1285_v23 }
 0x1ef   : > { %v2105_v44 = vpop.eup %2104  ;;  %v1321_v62 = vmul.f32 1.442695, %v1301_v60 }
 0x1f0   : > { %v2107_v2 = vpop.eup %2106  ;;  %v1348_v0 = vadd.f32 1.0, %v2105_v44 }
 0x1f1   : > { %1380 = vst.msk [vmem:[%s2872_s30 + $0x10] sm:$0xff] %vm1377_vm1, %v2107_v2  ;;  %2108 = vpow2.f32 %v1321_v62 }
 0x1f2   : > { %2110 = vrcp.f32 %v1348_v0  ;;  %v1258_v45 = vpop.xlane.xlu2 %1257 }
 0x1f3   : > { %v1286_v3 = vadd.f32 %v2865_v33, %v1258_v45 }
 0x1f5   : > { %v1302_v5 = vsub.f32 0.0, %v1286_v3 }
 0x1f7   : > { %v2109_v6 = vpop.eup %2108  ;;  %v1323_v8 = vmul.f32 1.442695, %v1302_v5 }
 0x1f8   : > { %v2111_v28 = vpop.eup %2110  ;;  %v1349_v9 = vadd.f32 1.0, %v2109_v6 }
 0x1f9   : > { %1381 = vst.msk [vmem:[%s2872_s30 + $0x18] sm:$0xff] %vm1377_vm1, %v2111_v28  ;;  %2112 = vpow2.f32 %v1323_v8 }
 0x1fa   : > { %2114 = vrcp.f32 %v1349_v9  ;;  %v1260_v11 = vpop.xlane.xlu0 %1259 }
 0x1fb   : > { %v1287_v12 = vadd.f32 %v2865_v33, %v1260_v11 }
 0x1fd   : > { %v1303_v15 = vsub.f32 0.0, %v1287_v12 }
 0x1ff   : > { %v2113_v16 = vpop.eup %2112  ;;  %v1325_v26 = vmul.f32 1.442695, %v1303_v15 }
 0x200   : > { %v2115_v61 = vpop.eup %2114  ;;  %v1350_v17 = vadd.f32 1.0, %v2113_v16 }
 0x201   : > { %1382 = vst.msk [vmem:[%s2872_s30 + $0x20] sm:$0xff] %vm1377_vm1, %v2115_v61  ;;  %2116 = vpow2.f32 %v1325_v26 }
 0x202   : > { %2118 = vrcp.f32 %v1350_v17  ;;  %v1262_v54 = vpop.xlane.xlu1 %1261 }
 0x203   : > { %v1288_v18 = vadd.f32 %v2865_v33, %v1262_v54 }
 0x205   : > { %v1304_v51 = vsub.f32 0.0, %v1288_v18 }
 0x207   : > { %v2117_v21 = vpop.eup %2116  ;;  %v1327_v59 = vmul.f32 1.442695, %v1304_v51 }
 0x208   : > { %v2119_v24 = vpop.eup %2118  ;;  %v1351_v25 = vadd.f32 1.0, %v2117_v21 }
 0x209   : > { %1383 = vst.msk [vmem:[%s2872_s30 + $0x28] sm:$0xff] %vm1377_vm1, %v2119_v24  ;;  %2120 = vpow2.f32 %v1327_v59 }
 0x20a   : > { %2122 = vrcp.f32 %v1351_v25  ;;  %v1264_v27 = vpop.xlane.xlu2 %1263 }
 0x20b   : > { %v1289_v7 = vadd.f32 %v2865_v33, %v1264_v27 }
 0x20d   : > { %v1305_v29 = vsub.f32 0.0, %v1289_v7 }
 0x20f   : > { %v2121_v13 = vpop.eup %2120  ;;  %v1329_v31 = vmul.f32 1.442695, %v1305_v29 }
 0x210   : > { %v2123_v63 = vpop.eup %2122  ;;  %v1352_v30 = vadd.f32 1.0, %v2121_v13 }
 0x211   : > { %1384 = vst.msk [vmem:[%s2872_s30 + $0x30] sm:$0xff] %vm1377_vm1, %v2123_v63  ;;  %2124 = vpow2.f32 %v1329_v31 }
 0x212   : > { %2126 = vrcp.f32 %v1352_v30  ;;  %v1266_v32 = vpop.xlane.xlu0 %1265 }
 0x213   : > { %v1290_v34 = vadd.f32 %v2865_v33, %v1266_v32 }
 0x215   : > { %v1306_v20 = vsub.f32 0.0, %v1290_v34 }
 0x217   : > { %v2125_v35 = vpop.eup %2124  ;;  %v1331_v19 = vmul.f32 1.442695, %v1306_v20 }
 0x218   : > { %v2127_v36 = vpop.eup %2126  ;;  %v1353_v14 = vadd.f32 1.0, %v2125_v35 }
 0x219   : > { %1385 = vst.msk [vmem:[%s2872_s30 + $0x38] sm:$0xff] %vm1377_vm1, %v2127_v36  ;;  %2128 = vpow2.f32 %v1331_v19 }
 0x21a   : > { %2130 = vrcp.f32 %v1353_v14  ;;  %v1268_v49 = vpop.xlane.xlu1 %1267 }
 0x21b   : > { %v1291_v37 = vadd.f32 %v2865_v33, %v1268_v49 }
 0x21d   : > { %v1307_v39 = vsub.f32 0.0, %v1291_v37 }
 0x21f   : > { %v2129_v38 = vpop.eup %2128  ;;  %v1333_v22 = vmul.f32 1.442695, %v1307_v39 }
 0x220   : > { %v2131_v10 = vpop.eup %2130  ;;  %v1354_v4 = vadd.f32 1.0, %v2129_v38 }
 0x221   : > { %1386 = vst.msk [vmem:[%s2872_s30 + $0x40] sm:$0xff] %vm1377_vm1, %v2131_v10  ;;  %2132 = vpow2.f32 %v1333_v22 }
 0x222   : > { %2134 = vrcp.f32 %v1354_v4  ;;  %v1270_v40 = vpop.xlane.xlu2 %1269 }
 0x223   : > { %v1292_v41 = vadd.f32 %v2865_v33, %v1270_v40 }
 0x225   : > { %v1308_v42 = vsub.f32 0.0, %v1292_v41 }
 0x227   : > { %v2133_v43 = vpop.eup %2132  ;;  %v1335_v1 = vmul.f32 1.442695, %v1308_v42 }
 0x228   : > { %v2135_v58 = vpop.eup %2134  ;;  %v1355_v46 = vadd.f32 1.0, %v2133_v43 }
 0x229   : > { %1387 = vst.msk [vmem:[%s2872_s30 + $0x48] sm:$0xff] %vm1377_vm1, %v2135_v58  ;;  %2136 = vpow2.f32 %v1335_v1 }
 0x22a   : > { %2138 = vrcp.f32 %v1355_v46  ;;  %v1272_v47 = vpop.xlane.xlu0 %1271 }
 0x22b   : > { %v1293_v57 = vadd.f32 %v2865_v33, %v1272_v47 }
 0x22d   : > { %v1309_v48 = vsub.f32 0.0, %v1293_v57 }
 0x22f   : > { %v2137_v50 = vpop.eup %2136  ;;  %v1337_v53 = vmul.f32 1.442695, %v1309_v48 }
 0x230   : > { %v2139_v52 = vpop.eup %2138  ;;  %v1356_v55 = vadd.f32 1.0, %v2137_v50 }
 0x231   : > { %1388 = vst.msk [vmem:[%s2872_s30 + $0x50] sm:$0xff] %vm1377_vm1, %v2139_v52  ;;  %2140 = vpow2.f32 %v1337_v53 }
 0x232   : > { %2142 = vrcp.f32 %v1356_v55  ;;  %v1274_v56 = vpop.xlane.xlu1 %1273 }
 0x233   : > { %v1294_v23 = vadd.f32 %v2865_v33, %v1274_v56 }
 0x235   : > { %v1310_v60 = vsub.f32 0.0, %v1294_v23 }
 0x237   : > { %v2141_v44 = vpop.eup %2140  ;;  %v1339_v62 = vmul.f32 1.442695, %v1310_v60 }
 0x238   : > { %v2143_v2 = vpop.eup %2142  ;;  %v1357_v0 = vadd.f32 1.0, %v2141_v44 }
 0x239   : > { %1389 = vst.msk [vmem:[%s2872_s30 + $0x58] sm:$0xff] %vm1377_vm1, %v2143_v2  ;;  %2144 = vpow2.f32 %v1339_v62 }
 0x23a   : > { %2146 = vrcp.f32 %v1357_v0  ;;  %v1276_v45 = vpop.xlane.xlu2 %1275 }
 0x23b   : > { %v1295_v3 = vadd.f32 %v2865_v33, %v1276_v45 }
 0x23d   : > { %v1311_v5 = vsub.f32 0.0, %v1295_v3 }
 0x23f   : > { %v2145_v6 = vpop.eup %2144  ;;  %v1341_v8 = vmul.f32 1.442695, %v1311_v5 }
 0x240   : > { %v2147_v28 = vpop.eup %2146  ;;  %v1358_v9 = vadd.f32 1.0, %v2145_v6 }
 0x241   : > { %1390 = vst.msk [vmem:[%s2872_s30 + $0x60] sm:$0xff] %vm1377_vm1, %v2147_v28  ;;  %2148 = vpow2.f32 %v1341_v8 }
 0x242   : > { %2150 = vrcp.f32 %v1358_v9  ;;  %v1278_v11 = vpop.xlane.xlu0 %1277 }
 0x243   : > { %v1296_v12 = vadd.f32 %v2865_v33, %v1278_v11 }
 0x245   : > { %v1312_v15 = vsub.f32 0.0, %v1296_v12 }
 0x247   : > { %v2149_v16 = vpop.eup %2148  ;;  %v1343_v26 = vmul.f32 1.442695, %v1312_v15 }
 0x248   : > { %v2151_v61 = vpop.eup %2150  ;;  %v1359_v17 = vadd.f32 1.0, %v2149_v16 }
 0x249   : > { %1391 = vst.msk [vmem:[%s2872_s30 + $0x68] sm:$0xff] %vm1377_vm1, %v2151_v61  ;;  %2152 = vpow2.f32 %v1343_v26 }
 0x24a   : > { %2154 = vrcp.f32 %v1359_v17 }
 0x24f   : > { %v2153_v54 = vpop.eup %2152 }
 0x250   : > { %v2155_v18 = vpop.eup %2154  ;;  %v1360_v51 = vadd.f32 1.0, %v2153_v54 }
 0x251   : > { %1392 = vst.msk [vmem:[%s2872_s30 + $0x70] sm:$0xff] %vm1377_vm1, %v2155_v18 }
 0x252   : > { %2156 = vrcp.f32 %v1360_v51 }
 0x255   : > { %1400 = sbr.rel (!%p2373_p8) target bundleno = 650 (0x28a), region = 48 }
 0x258   : > { %v2157_v21 = vpop.eup %2156 }
 0x259   : > { %1393 = vst.msk [vmem:[%s2872_s30 + $0x78] sm:$0xff] %vm1377_vm1, %v2157_v21 }
 0x25a   : > { %s3049_s6 = smov (!%p1403_p7, %s1402_s6), 16 }
 0x25b   : > { %s1899_s14 = sshll.u32 %s3049_s6, 3 }
 0x25c   : > { %p1902_p11 = scmp.eq.s32.totalorder %s1899_s14, 0 }
 0x25d   : > { %s2932_s29 = sshrl.u32 (!%p1902_p11), %s3049_s6, 4 }
 0x25e   : > { %1411 = sbr.rel (%p1902_p11) target bundleno = 650 (0x28a), region = 52  ;;  %p1903_p8 = scmp.le.s32.totalorder (!%p1902_p11), %s2932_s29, 0 }
 0x263   : > { %1634 = sbr.rel (%p1903_p8) target bundleno = 633 (0x279), region = 134  ;;  %s3035_s4 = smov (!%p1903_p8), %s2926_s12 }
 0x264   : > { %s3036_s23 = smov (!%p1903_p8), %s2872_s30  ;;  %s2941_s16 = smov (!%p1903_p8), 0  }
 0x265   : > { %s2943_s17 = smov (!%p1903_p8), 0  }
 0x268 LB: >> { %v1504_v33 = vld [vmem:[%s2271_s23] sm:$0xff]  ;;  %v1506_v59 = vld [vmem:[%s2271_s23 + $0x8] sm:$0xff]  ;;  %v1508_v24 = vld [vmem:[%s2271_s23 + $0x10] sm:$0xff]  ;;  %s1536_s25 = sadd.s32 1, %s2275_s16  ;;  %s1498_s17 = sadd.s32 1, %s2279_s17   ;;  %s2279_s17 = sphi %s2943_s17, %s1498_s17   ;;  %s2275_s16 = sphi %s2941_s16, %s3039_s16   ;;  %s2271_s23 = sphi %s3036_s23, %s3038_s23   ;;  %s2267_s4 = sphi %s3035_s4, %s3037_s4  }
 0x269   : >> { %1505 = vst [vmem:[%s2267_s4] sm:$0xff] %v1504_v33  ;;  %v1510_v25 = vld [vmem:[%s2271_s23 + $0x18] sm:$0xff]  ;;  %p1537_p3 = scmp.ge.s32.totalorder %s1536_s25, %s2932_s29  ;;  %v1512_v27 = vld [vmem:[%s2271_s23 + $0x20] sm:$0xff]  ;;  %v1514_v7 = vld [vmem:[%s2271_s23 + $0x28] sm:$0xff]  ;;  %p1497_p4 = scmp.ge.s32.totalorder %s1498_s17, %s2932_s29 }
 0x26a   : >> { %1507 = vst [vmem:[%s2267_s4 + $0x8] sm:$0xff] %v1506_v59  ;;  %v1516_v29 = vld [vmem:[%s2271_s23 + $0x30] sm:$0xff]  ;;  %v1518_v13 = vld [vmem:[%s2271_s23 + $0x38] sm:$0xff]  ;;  %v1520_v31 = vld [vmem:[%s2271_s23 + $0x40] sm:$0xff] }
 0x26b   : >> { %1509 = vst [vmem:[%s2267_s4 + $0x10] sm:$0xff] %v1508_v24  ;;  %s3051_s25 = smov (%p1537_p3, %s1536_s25), 0  ;;  %v1522_v63 = vld [vmem:[%s2271_s23 + $0x48] sm:$0xff]  ;;  %v1524_v30 = vld [vmem:[%s2271_s23 + $0x50] sm:$0xff]  ;;  %v1526_v32 = vld [vmem:[%s2271_s23 + $0x58] sm:$0xff] }
 0x26c   : >> { %1511 = vst [vmem:[%s2267_s4 + $0x18] sm:$0xff] %v1510_v25  ;;  %s1904_s11 = sshll.u32 %s3051_s25, 7  ;;  %v1528_v34 = vld [vmem:[%s2271_s23 + $0x60] sm:$0xff]  ;;  %v1530_v20 = vld [vmem:[%s2271_s23 + $0x68] sm:$0xff]  ;;  %v1532_v35 = vld [vmem:[%s2271_s23 + $0x70] sm:$0xff]  ;;  %s3039_s16 = smov %s3051_s25 }
 0x26d   : >> { %1513 = vst [vmem:[%s2267_s4 + $0x20] sm:$0xff] %v1512_v27  ;;  %s1541_s13 = scalar_lea.vmem %s2872_s30, %s1904_s11 [#allocation5]   ;;  %s1542_s28 = scalar_lea.vmem %s2926_s12, %s1904_s11   ;;  %v1534_v19 = vld [vmem:[%s2271_s23 + $0x78] sm:$0xff] }
 0x26e   : >> { %1515 = vst [vmem:[%s2267_s4 + $0x28] sm:$0xff] %v1514_v7  ;;  %s3038_s23 = smov %s1541_s13 }
 0x26f   : >> { %1517 = vst [vmem:[%s2267_s4 + $0x30] sm:$0xff] %v1516_v29 }
 0x270   : >> { %1519 = vst [vmem:[%s2267_s4 + $0x38] sm:$0xff] %v1518_v13 }
 0x271   : >> { %1521 = vst [vmem:[%s2267_s4 + $0x40] sm:$0xff] %v1520_v31 }
 0x272   : >> { %1523 = vst [vmem:[%s2267_s4 + $0x48] sm:$0xff] %v1522_v63 }
 0x273   : >> { %1525 = vst [vmem:[%s2267_s4 + $0x50] sm:$0xff] %v1524_v30 }
 0x274   : >> { %1527 = vst [vmem:[%s2267_s4 + $0x58] sm:$0xff] %v1526_v32  ;;  %1500 = sbr.rel (!%p1497_p4) target bundleno = 616 (0x268), region = 140 }
 0x275   : >> { %1529 = vst [vmem:[%s2267_s4 + $0x60] sm:$0xff] %v1528_v34 }
 0x276   : >> { %1531 = vst [vmem:[%s2267_s4 + $0x68] sm:$0xff] %v1530_v20 }
 0x277   : >> { %1533 = vst [vmem:[%s2267_s4 + $0x70] sm:$0xff] %v1532_v35 }
 0x278   : >> { %1535 = vst [vmem:[%s2267_s4 + $0x78] sm:$0xff] %v1534_v19  ;;  %s3037_s4 = smov %s1542_s28 }
 0x279 PF: > { %s3005_s15 = sand.u32 15, %s3049_s6   ;;  %s1964_s10 = sshll.u32 %s2932_s29, 7 }
 0x27a   : > { %s1547_s18 = scalar_lea.vmem %s2872_s30, %s1964_s10 [#allocation5]   ;;  %s1549_s19 = scalar_lea.vmem %s2926_s12, %s1964_s10  }
 0x27b   : > { %p1909_p5 = scmp.le.s32.totalorder %s3005_s15, 0 }
 0x27c   : > { %s2281_s20 = smov (!%p1909_p5), %s1549_s19   ;;  %s2285_s7 = smov (!%p1909_p5), %s1547_s18  }
 0x27d   : > { %1648 = sbr.rel (%p1909_p5) target bundleno = 650 (0x28a), region = 145  ;;  %s2289_s26 = smov (!%p1909_p5), 0  }
 0x27e   : > { %s2293_s8 = smov (!%p1909_p5), 0  }
 0x282 LB: >> { %v1559_v36 = vld [vmem:[%s2287_s7] sm:$0xff]  ;;  %s1561_s6 = sadd.s32 1, %s2291_s26  ;;  %s1553_s8 = sadd.s32 1, %s2295_s8   ;;  %s2295_s8 = sphi %s2293_s8, %s1553_s8   ;;  %s2291_s26 = sphi %s2289_s26, %s2290_s26   ;;  %s2287_s7 = sphi %s2285_s7, %s1566_s7   ;;  %s2283_s20 = sphi %s2281_s20, %s1567_s20  }
 0x283   : >> { %1560 = vst [vmem:[%s2283_s20] sm:$0xff] %v1559_v36  ;;  %p1562_p6 = scmp.ge.s32.totalorder %s1561_s6, %s3005_s15  ;;  %p1552_p9 = scmp.ge.s32.totalorder %s1553_s8, %s3005_s15 }
 0x285   : >> { %s3053_s6 = smov (%p1562_p6, %s1561_s6), 0  ;;  %1555 = sbr.rel (!%p1552_p9) target bundleno = 642 (0x282), region = 151 }
 0x286   : >> { %s1910_s30 = sshll.u32 %s3053_s6, 3  ;;  %s2290_s26 = smov %s3053_s6  }
 0x287   : >> { %s1566_s7 = scalar_lea.vmem %s1547_s18, %s1910_s30 [#allocation5]   ;;  %s1567_s20 = scalar_lea.vmem %s1549_s19, %s1910_s30  }
 0x28a PF: > { %p16_p10 = scmp.ge.s32.totalorder %s2355_s24, 4   ;;  %s3040_s20 = smov %s2255_s21 }
 0x28b   : > { %s3041_s21 = smov %s2259_s22  ;;  %s3042_s22 = smov %s2365_s27 }
 0x28c   : > { %s3043_s23 = smov %s2355_s24  ;;  %18 = sbr.rel (!%p16_p10) target bundleno = 5 (0x5), region = 162 }
 0x291   :  { %1583 = vsyncpa [#allocation4], 1 }
 0x292   :  { %1585 = vsyncpa [#allocation4 + $0x1], 1 }

</bundles_post_ra>
